<compile_context>
chip_gen: v6e
topology: v6e:2x2x1
jax: 0.10.0
libtpu: 0.0.40
codegen_flags: <defaults>
</compile_context>

<pallas_src>
import functools

import jax
import jax.numpy as jnp
import numpy as np
from jax.experimental import pallas as pl
from jax.experimental.pallas import tpu as pltpu


# ----------------------------- Fused kernel (one grid step per batch element) -----------------------------
def _fused_kernel(x_ref, w1t_ref, b1_ref, w2t_ref, b2_ref, mtokt_ref,
                  hwflat_ref, hbflat_ref, ups_ref, w0_ref, b0_ref, y_ref,
                  *, rank):
    C = x_ref.shape[-1]
    x = x_ref[0]                                   # (N, C) f32
    xb = x.astype(jnp.bfloat16)                    # bf16 MXU operand, f32 accumulation below

    # --- lora_meta_net: Linear(C,64) -> ReLU -> Linear(64,in_size) ---
    h = jnp.dot(xb, w1t_ref[...], preferred_element_type=jnp.float32) + b1_ref[...]
    h = jnp.maximum(h, 0.0)
    prompt = jnp.dot(h, w2t_ref[...], preferred_element_type=jnp.float32) + b2_ref[...]   # (N, in_size)

    # --- mask logits + per-mask softmax over the spatial axis (H*W), mask-weighted feature ---
    logits = jnp.dot(prompt, mtokt_ref[...], preferred_element_type=jnp.float32)          # (N, M)
    logits = logits - jnp.max(logits, axis=0, keepdims=True)
    e = jnp.exp(logits)
    sm = e * pl.reciprocal(jnp.sum(e, axis=0, keepdims=True), approx=True)                # (N, M)
    msum = jnp.sum(sm, axis=1, keepdims=True)                                             # (N, 1)
    feat = jnp.sum(msum * prompt, axis=0, keepdims=True)                                  # (1, in_size)

    # --- hypernet (one batched matmul over all ranks) ---
    dflat = jnp.dot(feat, hwflat_ref[...], preferred_element_type=jnp.float32) \
        + hbflat_ref[...]                                                                 # (1, rank*C)

    # --- LoRA fold:  W_eff = W0 + sum_r up_scaled[:, r] (x) downT[r, :] ---
    wacc = w0_ref[...].astype(jnp.float32)                                                # (OUT, C)
    for r in range(rank):                          # static unroll; rank is tiny
        dr = dflat[:, r * C:(r + 1) * C]                                                  # (1, C) lane slice
        wacc = wacc + ups_ref[:, r:r + 1] * dr                                            # outer product
    w_effT = wacc.T.astype(jnp.bfloat16)                                                  # (C, OUT)

    # --- single fused linear: y = x @ W_eff^T + b0  (original layer + LoRA in one matmul) ---
    y = jnp.dot(xb, w_effT, preferred_element_type=jnp.float32) + b0_ref[...]             # (N, OUT)
    y_ref[0] = y.astype(y_ref.dtype)


# ----------------------------- One-time parameter preparation -----------------------------
def prepare_params(p):
    rank = p["up_w"].shape[1]
    scaling = float(p["alpha"]) / float(rank)
    return {
        "w1t": p["w1"].T.astype(jnp.bfloat16),                     # (C, 64)
        "b1": p["b1"][None, :].astype(jnp.float32),                # (1, 64)
        "w2t": p["w2"].T.astype(jnp.float32),                      # (64, in_size)
        "b2": p["b2"][None, :].astype(jnp.float32),                # (1, in_size)
        "mtokt": p["mask_tok"].T.astype(jnp.float32),              # (in_size, M)
        # hyper_w rows are flattened as r*C + c -> transpose gives (in_size, rank*C), C lane-dense per rank
        "hwflat": p["hyper_w"].T.astype(jnp.float32),              # (in_size, rank*C)
        "hbflat": p["hyper_b"][None, :].astype(jnp.float32),       # (1, rank*C)
        "ups": (p["up_w"] * scaling).astype(jnp.float32),          # (OUT, rank), alpha/rank pre-folded
        "w0": p["w0"].astype(jnp.bfloat16),                        # (OUT, C)
        "b0": p["b0"][None, :].astype(jnp.float32),                # (1, OUT)
        "rank": rank,
    }


# ----------------------------- Wrapper -----------------------------
def hyper_lora_forward(x, q):
    B, H, W, C = x.shape
    N = H * W
    out_f = q["w0"].shape[0]
    hid = q["w1t"].shape[1]
    in_size = q["w2t"].shape[1]
    num_mask = q["mtokt"].shape[1]
    rank = q["rank"]

    xf = x.reshape(B, N, C)
    kernel = functools.partial(_fused_kernel, rank=rank)

    y = pl.pallas_call(
        kernel,
        out_shape=jax.ShapeDtypeStruct((B, N, out_f), jnp.float32),
        grid=(B,),
        in_specs=[
            pl.BlockSpec((1, N, C), lambda b: (b, 0, 0)),            # x[b]
            pl.BlockSpec((C, hid), lambda b: (0, 0)),                # meta W1^T (bf16)
            pl.BlockSpec((1, hid), lambda b: (0, 0)),                # meta b1
            pl.BlockSpec((hid, in_size), lambda b: (0, 0)),          # meta W2^T
            pl.BlockSpec((1, in_size), lambda b: (0, 0)),            # meta b2
            pl.BlockSpec((in_size, num_mask), lambda b: (0, 0)),     # mask_token^T
            pl.BlockSpec((in_size, rank * C), lambda b: (0, 0)),     # hypernet W (flat, lane-dense)
            pl.BlockSpec((1, rank * C), lambda b: (0, 0)),           # hypernet b (flat)
            pl.BlockSpec((out_f, rank), lambda b: (0, 0)),           # lora_up.weight * scaling
            pl.BlockSpec((out_f, C), lambda b: (0, 0)),              # original W0 (bf16)
            pl.BlockSpec((1, out_f), lambda b: (0, 0)),              # original b0
        ],
        out_specs=pl.BlockSpec((1, N, out_f), lambda b: (b, 0, 0)),
        compiler_params=pltpu.CompilerParams(
            dimension_semantics=("parallel",),
            vmem_limit_bytes=48 * 1024 * 1024,
        ),
    )(xf, q["w1t"], q["b1"], q["w2t"], q["b2"], q["mtokt"],
      q["hwflat"], q["hbflat"], q["ups"], q["w0"], q["b0"])

    return y.reshape(B, H, W, out_f)


# ----------------------------- Plain-JAX f32 reference (for verification) -----------------------------
def reference(x, p):
    B, H, W, C = x.shape
    rank = p["up_w"].shape[1]
    scaling = float(p["alpha"]) / float(rank)
    out = x @ p["w0"].T + p["b0"]
    h = jax.nn.relu(x @ p["w1"].T + p["b1"])
    prompt = h @ p["w2"].T + p["b2"]
    mask = prompt @ p["mask_tok"].T                                         # (B,H,W,M)
    M = mask.shape[-1]
    mask = jnp.transpose(mask, (3, 0, 1, 2)).reshape(M, B, -1)
    mask = jax.nn.softmax(mask, axis=-1).reshape(M, B, H, W)
    mwf = jnp.sum(mask, axis=0)[..., None] * prompt
    feat = mwf.sum(axis=1).sum(axis=1)                                      # (B, in_size)
    # synthesized hypernet: down_weight = (hyper_w @ feat + hyper_b).reshape(rank, C).T
    downT = (feat @ p["hyper_w"].T + p["hyper_b"]).reshape(B, rank, C)
    lora_down = jnp.einsum("bhwc,brc->bhwr", x, downT)
    lora_out = lora_down @ p["up_w"].T * scaling
    return out + lora_out


if __name__ == "__main__":
    key = jax.random.PRNGKey(0)
    B, H, W = 2, 8, 8
    C, OUT, RANK, IN_SIZE, NUM_MASK, HID = 128, 128, 4, 128, 8, 64
    ks = jax.random.split(key, 11)

    def rnd(k, shape, s=0.05):
        return jax.random.normal(k, shape, jnp.float32) * s

    params = {
        "w0": rnd(ks[0], (OUT, C)),            # original_layer.weight
        "b0": rnd(ks[1], (OUT,)),              # original_layer.bias
        "w1": rnd(ks[2], (HID, C)),            # lora_meta_net.linear1.weight
        "b1": rnd(ks[3], (HID,)),              # lora_meta_net.linear1.bias
        "w2": rnd(ks[4], (IN_SIZE, HID)),      # lora_meta_net.linear2.weight
        "b2": rnd(ks[5], (IN_SIZE,)),          # lora_meta_net.linear2.bias
        "mask_tok": rnd(ks[6], (NUM_MASK, IN_SIZE)),   # lora_mask_token.weight
        "hyper_w": rnd(ks[7], (RANK * C, IN_SIZE)),    # synthetic hypernet weight
        "hyper_b": rnd(ks[8], (RANK * C,)),            # synthetic hypernet bias
        "up_w": rnd(ks[9], (OUT, RANK)),       # lora_up.weight (random instead of zeros)
        "alpha": 1.0,
    }
    x = rnd(ks[10], (B, H, W, C), s=1.0)

    q = prepare_params(params)
    y = jax.block_until_ready(hyper_lora_forward(x, q))
    y_ref = reference(x, params)
    # bf16 MXU operands with f32 accumulation -> bf16-level tolerance vs the f32 reference
    np.testing.assert_allclose(np.asarray(y), np.asarray(y_ref), rtol=2e-2, atol=2e-2)
    print("KERNEL_OK")
</pallas_src>

<mosaic_0001>
module attributes {stable_mosaic.version = 11 : i64} {
  func.func @_fused_kernel(%arg0: i32, %arg1: memref<1x64x128xf32, #tpu.memory_space<vmem>>, %arg2: memref<128x64xbf16, #tpu.memory_space<vmem>>, %arg3: memref<1x64xf32, #tpu.memory_space<vmem>>, %arg4: memref<64x128xf32, #tpu.memory_space<vmem>>, %arg5: memref<1x128xf32, #tpu.memory_space<vmem>>, %arg6: memref<128x8xf32, #tpu.memory_space<vmem>>, %arg7: memref<128x512xf32, #tpu.memory_space<vmem>>, %arg8: memref<1x512xf32, #tpu.memory_space<vmem>>, %arg9: memref<128x4xf32, #tpu.memory_space<vmem>>, %arg10: memref<128x128xbf16, #tpu.memory_space<vmem>>, %arg11: memref<1x128xf32, #tpu.memory_space<vmem>>, %arg12: memref<1x64x128xf32, #tpu.memory_space<vmem>>) attributes {dimension_semantics = [#tpu.dimension_semantics<parallel>], iteration_bounds = array<i64: 2>, scalar_prefetch = 0 : i64, scratch_operands = 0 : i64, tpu.core_type = #tpu.core_type<tc>, window_params = [{transform_indices = @transform_0, window_bounds = array<i64: 1, 64, 128>}, {pipeline_mode = #tpu.pipeline_mode<synchronous>, transform_indices = @transform_1, window_bounds = array<i64: 128, 64>}, {pipeline_mode = #tpu.pipeline_mode<synchronous>, transform_indices = @transform_2, window_bounds = array<i64: 1, 64>}, {pipeline_mode = #tpu.pipeline_mode<synchronous>, transform_indices = @transform_3, window_bounds = array<i64: 64, 128>}, {pipeline_mode = #tpu.pipeline_mode<synchronous>, transform_indices = @transform_4, window_bounds = array<i64: 1, 128>}, {pipeline_mode = #tpu.pipeline_mode<synchronous>, transform_indices = @transform_5, window_bounds = array<i64: 128, 8>}, {pipeline_mode = #tpu.pipeline_mode<synchronous>, transform_indices = @transform_6, window_bounds = array<i64: 128, 512>}, {pipeline_mode = #tpu.pipeline_mode<synchronous>, transform_indices = @transform_7, window_bounds = array<i64: 1, 512>}, {pipeline_mode = #tpu.pipeline_mode<synchronous>, transform_indices = @transform_8, window_bounds = array<i64: 128, 4>}, {pipeline_mode = #tpu.pipeline_mode<synchronous>, transform_indices = @transform_9, window_bounds = array<i64: 128, 128>}, {pipeline_mode = #tpu.pipeline_mode<synchronous>, transform_indices = @transform_10, window_bounds = array<i64: 1, 128>}, {transform_indices = @transform_11, window_bounds = array<i64: 1, 64, 128>}]} {
    %c0 = arith.constant 0 : index
    %c0_0 = arith.constant 0 : index
    %c0_1 = arith.constant 0 : index
    %0 = vector.load %arg1[%c0, %c0_0, %c0_1] : memref<1x64x128xf32, #tpu.memory_space<vmem>>, vector<1x64x128xf32>
    %1 = vector.shape_cast %0 : vector<1x64x128xf32> to vector<64x128xf32>
    %2 = arith.truncf %1 : vector<64x128xf32> to vector<64x128xbf16>
    %c0_2 = arith.constant 0 : index
    %c0_3 = arith.constant 0 : index
    %3 = vector.load %arg2[%c0_2, %c0_3] : memref<128x64xbf16, #tpu.memory_space<vmem>>, vector<128x64xbf16>
    %cst = arith.constant dense<0.000000e+00> : vector<64x64xf32>
    %4 = tpu.matmul %2, %3, %cst {dimension_numbers = #tpu.dot_dimension_numbers<[1], [0], [0], [1], [0, 0, 1, 1], [], []>} : vector<64x128xbf16>, vector<128x64xbf16>, vector<64x64xf32> -> vector<64x64xf32>
    %c0_4 = arith.constant 0 : index
    %c0_5 = arith.constant 0 : index
    %5 = vector.load %arg3[%c0_4, %c0_5] : memref<1x64xf32, #tpu.memory_space<vmem>>, vector<1x64xf32>
    %6 = vector.broadcast %5 : vector<1x64xf32> to vector<64x64xf32>
    %7 = arith.addf %4, %6 : vector<64x64xf32>
    %cst_6 = arith.constant 0.000000e+00 : f32
    %8 = vector.broadcast %cst_6 : f32 to vector<64x64xf32>
    %9 = arith.maximumf %7, %8 : vector<64x64xf32>
    %c0_7 = arith.constant 0 : index
    %c0_8 = arith.constant 0 : index
    %10 = vector.load %arg4[%c0_7, %c0_8] : memref<64x128xf32, #tpu.memory_space<vmem>>, vector<64x128xf32>
    %cst_9 = arith.constant dense<0.000000e+00> : vector<64x128xf32>
    %11 = tpu.matmul %9, %10, %cst_9 {dimension_numbers = #tpu.dot_dimension_numbers<[1], [0], [0], [1], [0, 0, 1, 1], [], []>} : vector<64x64xf32>, vector<64x128xf32>, vector<64x128xf32> -> vector<64x128xf32>
    %c0_10 = arith.constant 0 : index
    %c0_11 = arith.constant 0 : index
    %12 = vector.load %arg5[%c0_10, %c0_11] : memref<1x128xf32, #tpu.memory_space<vmem>>, vector<1x128xf32>
    %13 = vector.broadcast %12 : vector<1x128xf32> to vector<64x128xf32>
    %14 = arith.addf %11, %13 : vector<64x128xf32>
    %c0_12 = arith.constant 0 : index
    %c0_13 = arith.constant 0 : index
    %15 = vector.load %arg6[%c0_12, %c0_13] : memref<128x8xf32, #tpu.memory_space<vmem>>, vector<128x8xf32>
    %cst_14 = arith.constant dense<0.000000e+00> : vector<64x8xf32>
    %16 = tpu.matmul %14, %15, %cst_14 {dimension_numbers = #tpu.dot_dimension_numbers<[1], [0], [0], [1], [0, 0, 1, 1], [], []>} : vector<64x128xf32>, vector<128x8xf32>, vector<64x8xf32> -> vector<64x8xf32>
    %cst_15 = arith.constant dense<0xFF800000> : vector<8xf32>
    %17 = vector.multi_reduction <maximumf>, %16, %cst_15 [0] : vector<64x8xf32> to vector<8xf32>
    %18 = vector.shape_cast %17 : vector<8xf32> to vector<1x8xf32>
    %19 = vector.broadcast %18 : vector<1x8xf32> to vector<64x8xf32>
    %20 = arith.subf %16, %19 : vector<64x8xf32>
    %21 = math.exp %20 : vector<64x8xf32>
    %cst_16 = arith.constant dense<0.000000e+00> : vector<8xf32>
    %22 = vector.multi_reduction <add>, %21, %cst_16 [0] : vector<64x8xf32> to vector<8xf32>
    %23 = vector.shape_cast %22 : vector<8xf32> to vector<1x8xf32>
    %24 = tpu.reciprocal %23 {approx = true} : vector<1x8xf32> -> vector<1x8xf32>
    %25 = vector.broadcast %24 : vector<1x8xf32> to vector<64x8xf32>
    %26 = arith.mulf %21, %25 : vector<64x8xf32>
    %cst_17 = arith.constant dense<0.000000e+00> : vector<64xf32>
    %27 = vector.multi_reduction <add>, %26, %cst_17 [1] : vector<64x8xf32> to vector<64xf32>
    %28 = vector.shape_cast %27 : vector<64xf32> to vector<64x1xf32>
    %29 = vector.broadcast %28 : vector<64x1xf32> to vector<64x128xf32>
    %30 = arith.mulf %29, %14 : vector<64x128xf32>
    %cst_18 = arith.constant dense<0.000000e+00> : vector<128xf32>
    %31 = vector.multi_reduction <add>, %30, %cst_18 [0] : vector<64x128xf32> to vector<128xf32>
    %32 = vector.shape_cast %31 : vector<128xf32> to vector<1x128xf32>
    %c0_19 = arith.constant 0 : index
    %c0_20 = arith.constant 0 : index
    %33 = vector.load %arg7[%c0_19, %c0_20] : memref<128x512xf32, #tpu.memory_space<vmem>>, vector<128x512xf32>
    %cst_21 = arith.constant dense<0.000000e+00> : vector<1x512xf32>
    %34 = tpu.matmul %32, %33, %cst_21 {dimension_numbers = #tpu.dot_dimension_numbers<[1], [0], [0], [1], [0, 0, 1, 1], [], []>} : vector<1x128xf32>, vector<128x512xf32>, vector<1x512xf32> -> vector<1x512xf32>
    %c0_22 = arith.constant 0 : index
    %c0_23 = arith.constant 0 : index
    %35 = vector.load %arg8[%c0_22, %c0_23] : memref<1x512xf32, #tpu.memory_space<vmem>>, vector<1x512xf32>
    %36 = arith.addf %34, %35 : vector<1x512xf32>
    %c0_24 = arith.constant 0 : index
    %c0_25 = arith.constant 0 : index
    %37 = vector.load %arg10[%c0_24, %c0_25] : memref<128x128xbf16, #tpu.memory_space<vmem>>, vector<128x128xbf16>
    %38 = arith.extf %37 : vector<128x128xbf16> to vector<128x128xf32>
    %39 = vector.extract_strided_slice %36 {offsets = [0, 0], sizes = [1, 128], strides = [1, 1]} : vector<1x512xf32> to vector<1x128xf32>
    %c0_26 = arith.constant 0 : index
    %c0_27 = arith.constant 0 : index
    %40 = vector.load %arg9[%c0_26, %c0_27] : memref<128x4xf32, #tpu.memory_space<vmem>>, vector<128x1xf32>
    %41 = vector.broadcast %40 : vector<128x1xf32> to vector<128x128xf32>
    %42 = vector.broadcast %39 : vector<1x128xf32> to vector<128x128xf32>
    %43 = arith.mulf %41, %42 : vector<128x128xf32>
    %44 = arith.addf %38, %43 : vector<128x128xf32>
    %45 = vector.extract_strided_slice %36 {offsets = [0, 128], sizes = [1, 128], strides = [1, 1]} : vector<1x512xf32> to vector<1x128xf32>
    %c0_28 = arith.constant 0 : index
    %c1 = arith.constant 1 : index
    %46 = vector.load %arg9[%c0_28, %c1] : memref<128x4xf32, #tpu.memory_space<vmem>>, vector<128x1xf32>
    %47 = vector.broadcast %46 : vector<128x1xf32> to vector<128x128xf32>
    %48 = vector.broadcast %45 : vector<1x128xf32> to vector<128x128xf32>
    %49 = arith.mulf %47, %48 : vector<128x128xf32>
    %50 = arith.addf %44, %49 : vector<128x128xf32>
    %51 = vector.extract_strided_slice %36 {offsets = [0, 256], sizes = [1, 128], strides = [1, 1]} : vector<1x512xf32> to vector<1x128xf32>
    %c0_29 = arith.constant 0 : index
    %c2 = arith.constant 2 : index
    %52 = vector.load %arg9[%c0_29, %c2] : memref<128x4xf32, #tpu.memory_space<vmem>>, vector<128x1xf32>
    %53 = vector.broadcast %52 : vector<128x1xf32> to vector<128x128xf32>
    %54 = vector.broadcast %51 : vector<1x128xf32> to vector<128x128xf32>
    %55 = arith.mulf %53, %54 : vector<128x128xf32>
    %56 = arith.addf %50, %55 : vector<128x128xf32>
    %57 = vector.extract_strided_slice %36 {offsets = [0, 384], sizes = [1, 128], strides = [1, 1]} : vector<1x512xf32> to vector<1x128xf32>
    %c0_30 = arith.constant 0 : index
    %c3 = arith.constant 3 : index
    %58 = vector.load %arg9[%c0_30, %c3] : memref<128x4xf32, #tpu.memory_space<vmem>>, vector<128x1xf32>
    %59 = vector.broadcast %58 : vector<128x1xf32> to vector<128x128xf32>
    %60 = vector.broadcast %57 : vector<1x128xf32> to vector<128x128xf32>
    %61 = arith.mulf %59, %60 : vector<128x128xf32>
    %62 = arith.addf %56, %61 : vector<128x128xf32>
    %63 = tpu.transpose %62, [1, 0] : vector<128x128xf32> -> vector<128x128xf32>
    %64 = arith.truncf %63 : vector<128x128xf32> to vector<128x128xbf16>
    %cst_31 = arith.constant dense<0.000000e+00> : vector<64x128xf32>
    %65 = tpu.matmul %2, %64, %cst_31 {dimension_numbers = #tpu.dot_dimension_numbers<[1], [0], [0], [1], [0, 0, 1, 1], [], []>} : vector<64x128xbf16>, vector<128x128xbf16>, vector<64x128xf32> -> vector<64x128xf32>
    %c0_32 = arith.constant 0 : index
    %c0_33 = arith.constant 0 : index
    %66 = vector.load %arg11[%c0_32, %c0_33] : memref<1x128xf32, #tpu.memory_space<vmem>>, vector<1x128xf32>
    %67 = vector.broadcast %66 : vector<1x128xf32> to vector<64x128xf32>
    %68 = arith.addf %65, %67 : vector<64x128xf32>
    %c0_34 = arith.constant 0 : index
    %c0_35 = arith.constant 0 : index
    %c0_36 = arith.constant 0 : index
    %69 = vector.load %arg12[%c0_34, %c0_35, %c0_36] : memref<1x64x128xf32, #tpu.memory_space<vmem>>, vector<1x64x128xf32>
    %70 = vector.shape_cast %69 : vector<1x64x128xf32> to vector<64x128xf32>
    %71 = vector.shape_cast %68 : vector<64x128xf32> to vector<1x64x128xf32>
    tpu.vector_store %arg12[%c0_34, %c0_35, %c0_36], %71 {strides = array<i32>} : memref<1x64x128xf32, #tpu.memory_space<vmem>>, vector<1x64x128xf32>,
    return
  }
  func.func @transform_0(%arg0: i32) -> (i32, i32, i32) {
    %c0_i32 = arith.constant 0 : i32
    %c0_i32_0 = arith.constant 0 : i32
    %c0_i32_1 = arith.constant 0 : i32
    return %arg0, %c0_i32, %c0_i32_0 : i32, i32, i32
  }
  func.func @transform_1(%arg0: i32) -> (i32, i32) {
    %c0_i32 = arith.constant 0 : i32
    %c0_i32_0 = arith.constant 0 : i32
    %c0_i32_1 = arith.constant 0 : i32
    return %c0_i32, %c0_i32_0 : i32, i32
  }
  func.func @transform_2(%arg0: i32) -> (i32, i32) {
    %c0_i32 = arith.constant 0 : i32
    %c0_i32_0 = arith.constant 0 : i32
    %c0_i32_1 = arith.constant 0 : i32
    return %c0_i32, %c0_i32_0 : i32, i32
  }
  func.func @transform_3(%arg0: i32) -> (i32, i32) {
    %c0_i32 = arith.constant 0 : i32
    %c0_i32_0 = arith.constant 0 : i32
    %c0_i32_1 = arith.constant 0 : i32
    return %c0_i32, %c0_i32_0 : i32, i32
  }
  func.func @transform_4(%arg0: i32) -> (i32, i32) {
    %c0_i32 = arith.constant 0 : i32
    %c0_i32_0 = arith.constant 0 : i32
    %c0_i32_1 = arith.constant 0 : i32
    return %c0_i32, %c0_i32_0 : i32, i32
  }
  func.func @transform_5(%arg0: i32) -> (i32, i32) {
    %c0_i32 = arith.constant 0 : i32
    %c0_i32_0 = arith.constant 0 : i32
    %c0_i32_1 = arith.constant 0 : i32
    return %c0_i32, %c0_i32_0 : i32, i32
  }
  func.func @transform_6(%arg0: i32) -> (i32, i32) {
    %c0_i32 = arith.constant 0 : i32
    %c0_i32_0 = arith.constant 0 : i32
    %c0_i32_1 = arith.constant 0 : i32
    return %c0_i32, %c0_i32_0 : i32, i32
  }
  func.func @transform_7(%arg0: i32) -> (i32, i32) {
    %c0_i32 = arith.constant 0 : i32
    %c0_i32_0 = arith.constant 0 : i32
    %c0_i32_1 = arith.constant 0 : i32
    return %c0_i32, %c0_i32_0 : i32, i32
  }
  func.func @transform_8(%arg0: i32) -> (i32, i32) {
    %c0_i32 = arith.constant 0 : i32
    %c0_i32_0 = arith.constant 0 : i32
    %c0_i32_1 = arith.constant 0 : i32
    return %c0_i32, %c0_i32_0 : i32, i32
  }
  func.func @transform_9(%arg0: i32) -> (i32, i32) {
    %c0_i32 = arith.constant 0 : i32
    %c0_i32_0 = arith.constant 0 : i32
    %c0_i32_1 = arith.constant 0 : i32
    return %c0_i32, %c0_i32_0 : i32, i32
  }
  func.func @transform_10(%arg0: i32) -> (i32, i32) {
    %c0_i32 = arith.constant 0 : i32
    %c0_i32_0 = arith.constant 0 : i32
    %c0_i32_1 = arith.constant 0 : i32
    return %c0_i32, %c0_i32_0 : i32, i32
  }
  func.func @transform_11(%arg0: i32) -> (i32, i32, i32) {
    %c0_i32 = arith.constant 0 : i32
    %c0_i32_0 = arith.constant 0 : i32
    %c0_i32_1 = arith.constant 0 : i32
    return %arg0, %c0_i32, %c0_i32_0 : i32, i32, i32
  }
}

</mosaic_0001>

<bundles_post_ra>
// kernel: tpu_custom_call.1
= control target key start
LH: loop header
LB: loop body
LE: loop exit
PB: predicated region body
PF: predicated region fallthrough
CT: control target
= control target key end

     0   :  { %s3138_s0 = inlined_call_operand.vmem [shape: f32[2,64,128], index: 0, kind: input, shape index: {}]   ;;  %s3139_s1 = inlined_call_operand.vmem [shape: bf16[128,64], index: 1, kind: input, shape index: {}]   ;;  %s3140_s2 = inlined_call_operand.vmem [shape: f32[1,64], index: 2, kind: input, shape index: {}]   ;;  %s3141_s3 = inlined_call_operand.vmem [shape: f32[64,128], index: 3, kind: input, shape index: {}]   ;;  %s3142_s4 = inlined_call_operand.vmem [shape: f32[1,128], index: 4, kind: input, shape index: {}]   ;;  %s3143_s5 = inlined_call_operand.vmem [shape: f32[128,8], index: 5, kind: input, shape index: {}]   ;;  %s3144_s6 = inlined_call_operand.hbm [shape: f32[128,512], index: 6, kind: input, shape index: {}]   ;;  %s3145_s7 = inlined_call_operand.vmem [shape: f32[1,512], index: 7, kind: input, shape index: {}]   ;;  %s3146_s8 = inlined_call_operand.vmem [shape: f32[128,4], index: 8, kind: input, shape index: {}]   ;;  %s3147_s9 = inlined_call_operand.vmem [shape: bf16[128,128], index: 9, kind: input, shape index: {}]   ;;  %s3148_s10 = inlined_call_operand.vmem [shape: f32[1,128], index: 10, kind: input, shape index: {}]   ;;  %s3149_s11 = inlined_call_operand.hbm [shape: f32[2,64,128], index: 11, kind: output, shape index: {}]  }
   0x1   :  { %3153 = sst [smem:[#allocation13_spill]] %s3144_s6 }
   0x2   :  { %16 = vsyncpa [#allocation3], 0 }
   0x3   :  { %17 = vsyncpa [#allocation4], 0 }
   0x4   :  { %19 = vsyncpa [#allocation4 + $0x1], 0  ;;  %s2397_s17 = smov 0   ;;  %s2399_s18 = smov 0  }
   0x5   :  { %s2401_s19 = smov 0   ;;  %s2403_s20 = smov 0  }
   0x6 LB: > { %s2418_s21 = sadd.s32 4294967295, %s2324_s20   ;;  %s1844_s22 = sadd.s32 4294967294, %s2324_s20   ;;  %s2324_s20 = sphi %s2403_s20, %s3172_s20   ;;  %s2320_s19 = sphi %s2401_s19, %s3171_s19   ;;  %s2316_s18 = sphi %s2399_s18, %s3170_s18   ;;  %s2312_s17 = sphi %s2397_s17, %s3169_s17  }
   0x7   : > { %s2422_s23 = sadd.s32 1, %s2324_s20   ;;  %s268_s24 = sadd.s32 1, %s2320_s19 }
   0x8   : > { %s265_s25 = ssub.s32 %s2324_s20, %s2422_s23  ;;  %p278_p0 = scmp.ne.s32.totalorder %s2320_s19, %s2316_s18 }
   0x9   : > { %p266_p1 = scmp.eq.s32.totalorder %s265_s25, 0  ;;  %p279_p2 = scmp.eq.s32.totalorder %s2418_s21, 1 }
   0xa   : > { %p284_p3 = scmp.ne.s32.totalorder %s2316_s18, %s2312_s17  ;;  %p285_p4 = scmp.eq.s32.totalorder %s1844_s22, 1 }
   0xb   : > { %s2433_s26 = scalar_select %p266_p1, %s2320_s19, %s268_s24  }
   0xc   : > { %p2435_p5 = por %p279_p2, %p278_p0  ;;  %p2439_p6 = por %p285_p4, %p284_p3 }
   0xd   : > { %p1845_p7 = scmp.ge.s32.totalorder %s2324_s20, 1  ;;  %p292_p8 = scmp.lt.s32.totalorder %s2324_s20, 3 }
   0xe   : > { %s3155_s28 = scalar_select %p2439_p6, 1, 0 }
   0xf   : > { %p2116_p9 = scmp.eq.s32.totalorder %s2418_s21, 0  ;;  %p2446_p10 = pnand %p1845_p7, %p292_p8 }
  0x10   : > { %s2326_s30 = smov [#allocation2]  }
  0x11   : > { %s319_s12 = sshll.u32 %s2326_s30, 4  ;;  %p2108_p11 = pneg %p2446_p10  ;;  %s320_s12 = int_to_ptr.vmem [resolvable:$true] %s319_s12 }
  0x12   : > { %s2245_s13 = scalar_lea.vmem %s320_s12, 8192  ;;  %p2253_p3 = scmp.lt.s32.totalorder %s320_s12, %s320_s12 }
  0x13   : > { %p2109_p12 = pnand %p2116_p9, %p2108_p11  ;;  %p2246_p0 = scmp.ne.s32.totalorder %s320_s12, %s2245_s13 }
  0x14   : > { %p2254_p4 = scmp.lt.s32.totalorder %s2245_s13, %s2245_s13 }
  0x15   : > { %p2236_p13 = pneg %p2109_p12 }
  0x16   : > { %p2255_p6 = por %p2254_p4, %p2253_p3 }
  0x17   : > { %p2248_p1 = pnand %p2246_p0, %p2236_p13 }
  0x19   : > { %p2249_p2 = pneg %p2248_p1 }
  0x1b   : > { %p2256_p7 = pnand %p2255_p6, %p2249_p2 }
  0x1d   : > { %2259 = shalt.err (!%p2256_p7)
}
  0x1e   : > { %s2327_s14 = smov 512   ;;  %s2328_s15 = smov 32  }
  0x1f   : > { %s3157_s6 = sld [smem:[#allocation13_spill]] }
  0x21   : > { %355 = sbr.rel (%p2446_p10) target bundleno = 1581 (0x62d), region = 64 }
  0x25   : > { %2111 = dma.hbm_to_vmem [thread:$0]  (!%p2109_p12), %s3157_s6, 8192, %s320_s12, [#allocation3], %s2327_s14, %s2327_s14, %s2328_s15  }
  0x26   : > { %2303 = dma.done.wait (%p2116_p9), [#allocation3], 8192  }
  0x27   : > { %2305 = vsyncadd (%p2116_p9), [#allocation3], 4294959104  ;;  %p395_p8 = scmp.lt.s32.totalorder %s2418_s21, 1  ;;  %v2208_v0 = vld [vmem:[%s3139_s1 + $0x38] sm:$0xff]   ;;  %v2209_v1 = vld [vmem:[%s3139_s1 + $0x30] sm:$0xff]   ;;  %vm572_vm0 = vcmask 523264  }
  0x28   : > { %1982 = vmatprep.subr.bf16.mxu0 %v2208_v0  ;;  %v2210_v2 = vld [vmem:[%s3139_s1 + $0x28] sm:$0xff]   ;;  %v2211_v3 = vld [vmem:[%s3139_s1 + $0x20] sm:$0xff]   ;;  %v564_v7 = vld [vmem:[%s3141_s3 + $0x38] sm:$0xff]  ;;  %vm823_vm1 = vcmask 64512   ;;  %s392_s13 = sand.u32 1, %s2316_s18   ;;  %s1878_s22 = sshll.u32 %s2418_s21, 10 }
  0x29   : > { %s396_s24 = scalar_select %p395_p8, %s2418_s21, 1  ;;  %1983 = vmatpush3.bf16.msra.mxu0 %v2208_v0  ;;  %v563_v8 = vld [vmem:[%s3141_s3 + $0x30] sm:$0xff]  ;;  %v2212_v9 = vld [vmem:[%s3139_s1 + $0x18] sm:$0xff]   ;;  %2006 = vmatprep.subr.mxu1 %v564_v7  ;;  %v562_v10 = vld [vmem:[%s3141_s3 + $0x28] sm:$0xff] }
  0x2a   : > { %1984 = vmatprep.subr.bf16.mxu0 %v2209_v1  ;;  %2007 = vmatpush3.msra.mxu1 %v564_v7  ;;  %v2213_v11 = vld [vmem:[%s3139_s1 + $0x10] sm:$0xff]   ;;  %v2214_v12 = vld [vmem:[%s3139_s1 + $0x8] sm:$0xff]   ;;  %v2215_v13 = vld [vmem:[%s3139_s1] sm:$0xff]   ;;  %s1850_s16 = sshll.u32 %s392_s13, 6 }
  0x2b   : > { %s1877_s29 = sshll.u32 %s396_s24, 6  ;;  %2008 = vmatprep.subr.mxu1 %v563_v8  ;;  %v561_v23 = vld [vmem:[%s3141_s3 + $0x20] sm:$0xff]  ;;  %v560_v24 = vld [vmem:[%s3141_s3 + $0x18] sm:$0xff]  ;;  %v559_v25 = vld [vmem:[%s3141_s3 + $0x10] sm:$0xff]  ;;  %s394_s14 = scalar_lea.vmem [#allocation5], %s1850_s16 }
  0x2c   : > { %s2477_s6 = scalar_lea.vmem %s3138_s0, %s1877_s29  ;;  %2009 = vmatpush3.msra.mxu1 %v563_v8  ;;  %v558_v26 = vld [vmem:[%s3141_s3 + $0x8] sm:$0xff]  ;;  %v557_v27 = vld [vmem:[%s3141_s3] sm:$0xff]  ;;  %v717_v28 = vld [vmem:[%s3143_s5 + $0x78] sm:$0xff]  ;;  %s1770_s15 = sshll.u32 %s394_s14, 4  ;;  %s3089_s15 = int_to_ptr.vmem [resolvable:$true] %s1770_s15 }
  0x2d   : > { %1985 = vmatpush3.bf16.msra.mxu0 %v2209_v1  ;;  %v401_v4 = vld [vmem:[%s2477_s6] sm:$0xff]  ;;  %v402_v5 = vld [vmem:[%s2477_s6 + $0x8] sm:$0xff]  ;;  %2010 = vmatprep.subr.mxu1 %v562_v10  ;;  %v403_v14 = vld [vmem:[%s2477_s6 + $0x10] sm:$0xff]  ;;  %s3098_s24 = scalar_lea.sflag [#allocation4], %s392_s13  ;;  %s2260_s21 = scalar_lea.vmem %s3089_s15, 1024 }
  0x2e   : > { %1986 = vmatprep.subr.bf16.mxu0 %v2210_v2  ;;  %v2484_v6 = vpack.c.bf16 %v402_v5, %v401_v4  ;;  %2011 = vmatpush3.msra.mxu1 %v562_v10  ;;  %v404_v15 = vld [vmem:[%s2477_s6 + $0x18] sm:$0xff]  ;;  %v405_v16 = vld [vmem:[%s2477_s6 + $0x20] sm:$0xff]  ;;  %v406_v17 = vld [vmem:[%s2477_s6 + $0x28] sm:$0xff]  ;;  %p2261_p6 = scmp.ne.s32.totalorder %s3089_s15, %s2260_s21  ;;  %s2334_s16 = smov [#allocation5]  }
  0x2f   : > { %v2512_v18 = vpack.c.bf16 %v404_v15, %v403_v14  ;;  %v2514_v19 = vpack.c.bf16 %v406_v17, %v405_v16  ;;  %v407_v20 = vld [vmem:[%s2477_s6 + $0x30] sm:$0xff]  ;;  %v408_v21 = vld [vmem:[%s2477_s6 + $0x38] sm:$0xff]  ;;  %2012 = vmatprep.subr.mxu1 %v561_v23  ;;  %v1853_v30 = vld [vmem:[%s3140_s2] ss:$0 sm:$0xff]  ;;  %s3094_s6 = scalar_lea.hbm %s3149_s11, %s1878_s22  ;;  %s2264_s29 = sshll.u32 %s2334_s16, 4  ;;  %s2265_s29 = int_to_ptr.vmem [resolvable:$false] %s2264_s29 }
  0x30   : > { %1998 = vmatprep.mubr.bf16.mxu0 %v2484_v6  ;;  %v2520_v22 = vpack.c.bf16 %v408_v21, %v407_v20  ;;  %2013 = vmatpush3.msra.mxu1 %v561_v23  ;;  %v716_v43 = vld [vmem:[%s3143_s5 + $0x70] sm:$0xff]  ;;  %v715_v46 = vld [vmem:[%s3143_s5 + $0x68] sm:$0xff]  ;;  %v714_v51 = vld [vmem:[%s3143_s5 + $0x60] sm:$0xff]  ;;  %p2262_p9 = pnand %p2261_p6, %p2435_p5  ;;  %s2266_s12 = scalar_lea.vmem %s2265_s29, 2048 }
  0x31   : > { %1987 = vmatpush3.bf16.msra.mxu0 %v2210_v2  ;;  %3158 = vst [vmem:[#allocation8_spill] sm:$0xff] %v2512_v18  ;;  %3159 = vst [vmem:[#allocation9_spill] sm:$0xff] %v2514_v19  ;;  %2014 = vmatprep.subr.mxu1 %v560_v24  ;;  %v713_v53 = vld [vmem:[%s3143_s5 + $0x58] sm:$0xff]  ;;  %v712_v57 = vld [vmem:[%s3143_s5 + $0x50] sm:$0xff]  ;;  %p2267_p11 = scmp.lt.s32.totalorder %s3089_s15, %s2265_s29  ;;  %p2268_p12 = scmp.lt.s32.totalorder %s2266_s12, %s2260_s21 }
  0x32   : > { %1988 = vmatprep.subr.bf16.mxu0 %v2211_v3  ;;  %3160 = vst [vmem:[#allocation10_spill] sm:$0xff] %v2520_v22  ;;  %2015 = vmatpush3.msra.mxu1 %v560_v24  ;;  %v711_v58 = vld [vmem:[%s3143_s5 + $0x48] sm:$0xff]  ;;  %v710_v60 = vld [vmem:[%s3143_s5 + $0x40] sm:$0xff]  ;;  %v709_v61 = vld [vmem:[%s3143_s5 + $0x38] sm:$0xff]  ;;  %p2263_p10 = pneg %p2262_p9 }
  0x33   : > { %2016 = vmatprep.subr.mxu1 %v559_v25  ;;  %v708_v62 = vld [vmem:[%s3143_s5 + $0x30] sm:$0xff]  ;;  %v707_v63 = vld [vmem:[%s3143_s5 + $0x28] sm:$0xff]  ;;  %v706_v0 = vld [vmem:[%s3143_s5 + $0x20] sm:$0xff]  ;;  %p2269_p13 = por %p2268_p12, %p2267_p11 }
  0x34   : > { %2017 = vmatpush3.msra.mxu1 %v559_v25  ;;  %v705_v1 = vld [vmem:[%s3143_s5 + $0x18] sm:$0xff]  ;;  %v704_v2 = vld [vmem:[%s3143_s5 + $0x10] sm:$0xff]  ;;  %v702_v4 = vld [vmem:[%s3143_s5] sm:$0xff] }
  0x35   : > { %1989 = vmatpush3.bf16.msra.mxu0 %v2211_v3  ;;  %2018 = vmatprep.subr.mxu1 %v558_v26  ;;  %v703_v3 = vld [vmem:[%s3143_s5 + $0x8] sm:$0xff]  ;;  %v1862_v7 = vld [vmem:[%s3142_s4] ss:$0 sm:$0xff]  ;;  %p2270_p0 = pnand %p2269_p13, %p2263_p10 }
  0x36   : > { %1990 = vmatprep.subr.bf16.mxu0 %v2212_v9  ;;  %2019 = vmatpush3.msra.mxu1 %v558_v26  ;;  %v2329_v26 = vmov 0  }
  0x37   : > { %2020 = vmatprep.subr.mxu1 %v557_v27  ;;  %2161 = vset.pattern.permute.xlu1 %v2329_v26 }
  0x38   : > { %2021 = vmatpush3.msra.mxu1 %v557_v27 }
  0x39   : > { %1991 = vmatpush3.bf16.msra.mxu0 %v2212_v9  ;;  %2034 = vmatprep.subr.mxu1 %v717_v28 }
  0x3a   : > { %1992 = vmatprep.subr.bf16.mxu0 %v2213_v11 }
  0x3d   : > { %1993 = vmatpush3.bf16.msra.mxu0 %v2213_v11 }
  0x3e   : > { %1994 = vmatprep.subr.bf16.mxu0 %v2214_v12 }
  0x41   : > { %1995 = vmatpush3.bf16.msra.mxu0 %v2214_v12 }
  0x42   : > { %1996 = vmatprep.subr.bf16.mxu0 %v2215_v13 }
  0x45   : > { %1997 = vmatpush3.bf16.msra.mxu0 %v2215_v13 }
  0x48   : > { %1999 = vmatmul.mubr.bf16.vlgmr.msra.gmra.mxu0 %v2512_v18 }
  0x49   : > { %2002 = vmatprep.mubr.bf16.mxu0 %v2514_v19 }
  0x50   : > { %2003 = vmatmul.mubr.bf16.gmra.mxu0 %v2520_v22 }
 0x108   : > { %v2000_v29 = vpop.f32.mrf.mxu0 }
 0x109   : > { %v527_v35 = vadd.f32 %v2000_v29, %v1853_v30 }
 0x10a   : > { %v518_v31 = vpop.f32.mrf.mxu0 }
 0x10b   : > { %v519_v32 = vadd.f32 %v1853_v30, %v518_v31  ;;  %v551_v41 = vmax.f32 %v527_v35, 0.0 }
 0x10c   : > { %v2001_v33 = vpop.f32.mrf.mxu0 }
 0x10d   : > { %v549_v34 = vmax.f32 %v519_v32, 0.0  ;;  %v530_v39 = vadd.f32 %v2001_v33, %v1853_v30 }
 0x10e   : > { %v521_v36 = vpop.f32.mrf.mxu0 }
 0x10f   : > { %v522_v37 = vadd.f32 %v1853_v30, %v521_v36  ;;  %2022 = vmatprep.mubr.msk.f32.mxu1 %vm572_vm0, %v549_v34  ;;  %v552_v47 = vmax.f32 %v530_v39, 0.0 }
 0x110   : > { %v2004_v38 = vpop.f32.mrf.mxu0 }
 0x111   : > { %v550_v40 = vmax.f32 %v522_v37, 0.0  ;;  %v543_v49 = vadd.f32 %v2004_v38, %v1853_v30 }
 0x112   : > { %v534_v42 = vpop.f32.mrf.mxu0 }
 0x113   : > { %v535_v44 = vadd.f32 %v1853_v30, %v534_v42  ;;  %2023 = vmatmul.mubr.msk.f32.vlgmr.msra.gmra.mxu1 %vm572_vm0, %v550_v40  ;;  %v555_v56 = vmax.f32 %v543_v49, 0.0  ;;  %v2330_v49 = vmov 2  }
 0x114   : > { %v2005_v45 = vpop.f32.mrf.mxu0  ;;  %2025 = vmatprep.mubr.msk.f32.mxu1 %vm572_vm0, %v551_v41  ;;  %2035 = vmatpush3.msra.mxu1 %v717_v28 }
 0x115   : > { %v553_v48 = vmax.f32 %v535_v44, 0.0  ;;  %2036 = vmatprep.subr.mxu1 %v716_v43  ;;  %v546_v54 = vadd.f32 %v2005_v45, %v1853_v30  ;;  %2171 = vset.pattern.permute.xlu0 %v2330_v49 }
 0x116   : > { %v537_v50 = vpop.f32.mrf.mxu0  ;;  %2037 = vmatpush3.msra.mxu1 %v716_v43 }
 0x117   : > { %v538_v52 = vadd.f32 %v1853_v30, %v537_v50  ;;  %2026 = vmatmul.mubr.msk.f32.gmra.mxu1 %vm572_vm0, %v552_v47  ;;  %2038 = vmatprep.subr.mxu1 %v715_v46  ;;  %v556_v59 = vmax.f32 %v546_v54, 0.0 }
 0x118   : > { %2028 = vmatprep.mubr.msk.f32.mxu1 %vm572_vm0, %v553_v48  ;;  %2039 = vmatpush3.msra.mxu1 %v715_v46 }
 0x119   : > { %v554_v55 = vmax.f32 %v538_v52, 0.0  ;;  %2040 = vmatprep.subr.mxu1 %v714_v51 }
 0x11a   : > { %2041 = vmatpush3.msra.mxu1 %v714_v51 }
 0x11b   : > { %2029 = vmatmul.mubr.msk.f32.gmra.mxu1 %vm572_vm0, %v554_v55  ;;  %2042 = vmatprep.subr.mxu1 %v713_v53 }
 0x11c   : > { %2031 = vmatprep.mubr.msk.f32.mxu1 %vm572_vm0, %v555_v56  ;;  %2043 = vmatpush3.msra.mxu1 %v713_v53 }
 0x11d   : > { %2044 = vmatprep.subr.mxu1 %v712_v57 }
 0x11e   : > { %2045 = vmatpush3.msra.mxu1 %v712_v57 }
 0x11f   : > { %2032 = vmatmul.mubr.msk.f32.gmra.mxu1 %vm572_vm0, %v556_v59  ;;  %2046 = vmatprep.subr.mxu1 %v711_v58 }
 0x120   : > { %2047 = vmatpush3.msra.mxu1 %v711_v58 }
 0x121   : > { %2048 = vmatprep.subr.mxu1 %v710_v60 }
 0x122   : > { %2049 = vmatpush3.msra.mxu1 %v710_v60 }
 0x123   : > { %2050 = vmatprep.subr.mxu1 %v709_v61 }
 0x124   : > { %2051 = vmatpush3.msra.mxu1 %v709_v61 }
 0x125   : > { %2052 = vmatprep.subr.mxu1 %v708_v62 }
 0x126   : > { %2053 = vmatpush3.msra.mxu1 %v708_v62 }
 0x127   : > { %2054 = vmatprep.subr.mxu1 %v707_v63 }
 0x128   : > { %2055 = vmatpush3.msra.mxu1 %v707_v63 }
 0x129   : > { %2056 = vmatprep.subr.mxu1 %v706_v0 }
 0x12a   : > { %2057 = vmatpush3.msra.mxu1 %v706_v0 }
 0x12b   : > { %2058 = vmatprep.subr.mxu1 %v705_v1 }
 0x12c   : > { %2059 = vmatpush3.msra.mxu1 %v705_v1 }
 0x12d   : > { %2060 = vmatprep.subr.mxu1 %v704_v2 }
 0x12e   : > { %2061 = vmatpush3.msra.mxu1 %v704_v2 }
 0x12f   : > { %2062 = vmatprep.subr.mxu1 %v703_v3 }
 0x130   : > { %2063 = vmatpush3.msra.mxu1 %v703_v3 }
 0x131   : > { %2064 = vmatprep.subr.mxu1 %v702_v4 }
 0x132   : > { %2065 = vmatpush3.msra.mxu1 %v702_v4 }
 0x1d3   : > { %v2024_v5 = vpop.f32.mrf.mxu1 }
 0x1d4   : > { %v2602_v10 = vadd.f32 %v2024_v5, %v1862_v7 }
 0x1d5   : > { %v663_v8 = vpop.f32.mrf.mxu1 }
 0x1d6   : > { %v2600_v9 = vadd.f32 %v1862_v7, %v663_v8 }
 0x1d7   : > { %v2027_v11 = vpop.f32.mrf.mxu1 }
 0x1d8   : > { %2066 = vmatprep.mubr.f32.mxu1 %v2600_v9  ;;  %v2608_v14 = vadd.f32 %v2027_v11, %v1862_v7 }
 0x1d9   : > { %v673_v12 = vpop.f32.mrf.mxu1  ;;  %2067 = vmatmul.mubr.f32.vlgmr.msra.gmra.mxu1 %v2602_v10 }
 0x1da   : > { %v2606_v13 = vadd.f32 %v1862_v7, %v673_v12 }
 0x1db   : > { %v2030_v15 = vpop.f32.mrf.mxu1 }
 0x1dc   : > { %2069 = vmatprep.mubr.f32.mxu1 %v2606_v13  ;;  %v2614_v20 = vadd.f32 %v2030_v15, %v1862_v7 }
 0x1dd   : > { %v683_v16 = vpop.f32.mrf.mxu1  ;;  %2070 = vmatmul.mubr.f32.gmra.mxu1 %v2608_v14 }
 0x1de   : > { %v2612_v17 = vadd.f32 %v1862_v7, %v683_v16 }
 0x1df   : > { %v2033_v21 = vpop.f32.mrf.mxu1 }
 0x1e0   : > { %2072 = vmatprep.mubr.f32.mxu1 %v2612_v17  ;;  %v2620_v25 = vadd.f32 %v2033_v21, %v1862_v7 }
 0x1e1   : > { %v693_v23 = vpop.f32.mrf.mxu1  ;;  %2073 = vmatmul.mubr.f32.gmra.mxu1 %v2614_v20 }
 0x1e2   : > { %v2618_v24 = vadd.f32 %v1862_v7, %v693_v23 }
 0x1e4   : > { %2075 = vmatprep.mubr.f32.mxu1 %v2618_v24 }
 0x1e5   : > { %2076 = vmatmul.mubr.f32.gmra.mxu1 %v2620_v25 }
 0x299   : > { %v2068_v27 = vpop.f32.mrf.mxu1 }
 0x29a   : > { %v825_v40 = vsel %vm823_vm1, %v2068_v27, -inf }
 0x29b   : > { %v784_v28 = vpop.f32.mrf.mxu1 }
 0x29c   : > { %v824_v35 = vsel %vm823_vm1, %v784_v28, -inf }
 0x29d   : > { %v2071_v29 = vpop.f32.mrf.mxu1 }
 0x29e   : > { %v827_v41 = vsel %vm823_vm1, %v2071_v29, -inf }
 0x29f   : > { %v794_v30 = vpop.f32.mrf.mxu1 }
 0x2a0   : > { %v826_v42 = vsel %vm823_vm1, %v794_v30, -inf }
 0x2a1   : > { %v2074_v31 = vpop.f32.mrf.mxu1 }
 0x2a2   : > { %v830_v36 = vsel %vm823_vm1, %v2074_v31, -inf }
 0x2a3   : > { %v804_v32 = vpop.f32.mrf.mxu1  ;;  %v831_v44 = vmax.f32 %v825_v40, %v830_v36 }
 0x2a4   : > { %v828_v33 = vsel %vm823_vm1, %v804_v32, -inf }
 0x2a5   : > { %v2077_v34 = vpop.f32.mrf.mxu1  ;;  %v829_v38 = vmax.f32 %v824_v35, %v828_v33 }
 0x2a6   : > { %v834_v37 = vsel %vm823_vm1, %v2077_v34, -inf }
 0x2a7   : > { %v814_v39 = vpop.f32.mrf.mxu1  ;;  %v835_v45 = vmax.f32 %v827_v41, %v834_v37  ;;  %v836_v47 = vmax.f32 %v829_v38, %v831_v44 }
 0x2a8   : > { %v832_v43 = vsel %vm823_vm1, %v814_v39, -inf }
 0x2a9   : > { %v833_v46 = vmax.f32 %v826_v42, %v832_v43 }
 0x2ab   : > { %v837_v48 = vmax.f32 %v833_v46, %v835_v45 }
 0x2ad   : > { %v838_v50 = vmax.f32 %v836_v47, %v837_v48 }
 0x2af   : > { %v839_v51 = vrot.slane %v838_v50, 4 }
 0x2b1   : > { %v840_v52 = vmax.f32 %v838_v50, %v839_v51 }
 0x2b3   : > { %v841_v53 = vrot.slane %v840_v52, 2 }
 0x2b5   : > { %v842_v54 = vmax.f32 %v840_v52, %v841_v53 }
 0x2b7   : > { %v843_v55 = vrot.slane %v842_v54, 1 }
 0x2b9   : > { %v844_v56 = vmax.f32 %v842_v54, %v843_v55 }
 0x2bb   : > { %v845_v57 = vsub.f32 %v784_v28, %v844_v56  ;;  %v846_v58 = vsub.f32 %v2068_v27, %v844_v56  ;;  %v848_v59 = vsub.f32 %v2071_v29, %v844_v56  ;;  %v847_v62 = vsub.f32 %v794_v30, %v844_v56 }
 0x2bc   : > { %v849_v63 = vsub.f32 %v804_v32, %v844_v56  ;;  %v850_v1 = vsub.f32 %v2074_v31, %v844_v56  ;;  %v851_v3 = vsub.f32 %v814_v39, %v844_v56  ;;  %v852_v5 = vsub.f32 %v2077_v34, %v844_v56 }
 0x2bd   : > { %v853_v60 = vmul.f32 1.442695, %v845_v57  ;;  %v855_v61 = vmul.f32 1.442695, %v846_v58  ;;  %v859_v0 = vmul.f32 1.442695, %v848_v59 }
 0x2be   : > { %v857_v2 = vmul.f32 1.442695, %v847_v62  ;;  %v861_v4 = vmul.f32 1.442695, %v849_v63  ;;  %v863_v7 = vmul.f32 1.442695, %v850_v1 }
 0x2bf   : > { %2216 = vpow2.f32 %v853_v60  ;;  %v865_v8 = vmul.f32 1.442695, %v851_v3  ;;  %v867_v11 = vmul.f32 1.442695, %v852_v5  ;;  %v1005_v3 = vld [vmem:[#allocation2 + $0x1e8] sm:$0xff]  ;;  %v1004_v5 = vld [vmem:[#allocation2 + $0x1e0] sm:$0xff] }
 0x2c0   : > { %2218 = vpow2.f32 %v855_v61  ;;  %1030 = vmatprep.subr.mxu0 %v1005_v3  ;;  %v963_v3 = vld [vmem:[#allocation2 + $0x98] sm:$0xff] }
 0x2c1   : > { %2220 = vpow2.f32 %v859_v0  ;;  %1031 = vmatpush1.msra.mxu0 %v1004_v5  ;;  %v962_v5 = vld [vmem:[#allocation2 + $0x90] sm:$0xff] }
 0x2c2   : > { %2222 = vpow2.f32 %v857_v2 }
 0x2c3   : > { %2224 = vpow2.f32 %v861_v4  ;;  %v1007_v4 = vld [vmem:[#allocation2 + $0x1f8] sm:$0xff] }
 0x2c4   : > { %2226 = vpow2.f32 %v863_v7  ;;  %1101 = vmatprep.subr.mxu1 %v1007_v4  ;;  %v960_v4 = vld [vmem:[#allocation2 + $0x80] sm:$0xff] }
 0x2c5   : > { %2228 = vpow2.f32 %v865_v8 }
 0x2c6   : > { %2230 = vpow2.f32 %v867_v11  ;;  %v1006_v11 = vld [vmem:[#allocation2 + $0x1f0] sm:$0xff] }
 0x2c7   : > { %1102 = vmatpush1.msra.mxu1 %v1006_v11  ;;  %v2666_v11 = vld [vmem:[%s3146_s8 + $0x10] sm:$0xff] }
 0x2cc   : > { %v2217_v12 = vpop.eup %2216 }
 0x2cd   : > { %v2219_v15 = vpop.eup %2218  ;;  %v869_v16 = vsel %vm823_vm1, %v2217_v12, 0.0 }
 0x2ce   : > { %v870_v21 = vsel %vm823_vm1, %v2219_v15, 0.0  ;;  %v2221_v27 = vpop.eup %2220 }
 0x2cf   : > { %v871_v23 = vadd.f32 %v870_v21, %v869_v16  ;;  %v2223_v28 = vpop.eup %2222  ;;  %v874_v32 = vsel %vm823_vm1, %v2221_v27, 0.0  ;;  %v1000_v16 = vld [vmem:[#allocation2 + $0x1c0] sm:$0xff]  ;;  %v1002_v21 = vld [vmem:[#allocation2 + $0x1d0] sm:$0xff] }
 0x2d0   : > { %v872_v29 = vsel %vm823_vm1, %v2223_v28, 0.0  ;;  %v2225_v30 = vpop.eup %2224 }
 0x2d1   : > { %v873_v31 = vadd.f32 %v872_v29, %v871_v23  ;;  %v2227_v33 = vpop.eup %2226  ;;  %v876_v35 = vsel %vm823_vm1, %v2225_v30, 0.0  ;;  %v997_v23 = vld [vmem:[#allocation2 + $0x1a8] sm:$0xff]  ;;  %v998_v29 = vld [vmem:[#allocation2 + $0x1b0] sm:$0xff] }
 0x2d2   : > { %v2229_v36 = vpop.eup %2228  ;;  %v878_v38 = vsel %vm823_vm1, %v2227_v33, 0.0 }
 0x2d3   : > { %v875_v34 = vadd.f32 %v874_v32, %v873_v31  ;;  %v2231_v39 = vpop.eup %2230  ;;  %v880_v41 = vsel %vm823_vm1, %v2229_v36, 0.0  ;;  %v995_v31 = vld [vmem:[#allocation2 + $0x198] sm:$0xff]  ;;  %v992_v32 = vld [vmem:[#allocation2 + $0x180] sm:$0xff] }
 0x2d4   : > { %v882_v43 = vsel %vm823_vm1, %v2231_v39, 0.0 }
 0x2d5   : > { %v877_v37 = vadd.f32 %v876_v35, %v875_v34  ;;  %v989_v34 = vld [vmem:[#allocation2 + $0x168] sm:$0xff]  ;;  %v991_v35 = vld [vmem:[#allocation2 + $0x178] sm:$0xff] }
 0x2d7   : > { %v879_v40 = vadd.f32 %v878_v38, %v877_v37  ;;  %v990_v37 = vld [vmem:[#allocation2 + $0x170] sm:$0xff]  ;;  %v985_v38 = vld [vmem:[#allocation2 + $0x148] sm:$0xff] }
 0x2d9   : > { %v881_v42 = vadd.f32 %v880_v41, %v879_v40  ;;  %v984_v40 = vld [vmem:[#allocation2 + $0x140] sm:$0xff]  ;;  %v986_v41 = vld [vmem:[#allocation2 + $0x150] sm:$0xff] }
 0x2db   : > { %v883_v44 = vadd.f32 %v882_v43, %v881_v42  ;;  %v981_v42 = vld [vmem:[#allocation2 + $0x128] sm:$0xff]  ;;  %v983_v43 = vld [vmem:[#allocation2 + $0x138] sm:$0xff] }
 0x2dd   : > { %v884_v45 = vrot.slane %v883_v44, 4 }
 0x2df   : > { %v885_v46 = vadd.f32 %v884_v45, %v883_v44  ;;  %v980_v44 = vld [vmem:[#allocation2 + $0x120] sm:$0xff]  ;;  %v982_v45 = vld [vmem:[#allocation2 + $0x130] sm:$0xff] }
 0x2e1   : > { %v886_v47 = vrot.slane %v885_v46, 2 }
 0x2e3   : > { %v887_v48 = vadd.f32 %v886_v47, %v885_v46  ;;  %v977_v46 = vld [vmem:[#allocation2 + $0x108] sm:$0xff]  ;;  %v979_v47 = vld [vmem:[#allocation2 + $0x118] sm:$0xff] }
 0x2e5   : > { %v888_v50 = vrot.slane %v887_v48, 1 }
 0x2e7   : > { %v889_v51 = vadd.f32 %v888_v50, %v887_v48  ;;  %v2653_v48 = vld [vmem:[%s3146_s8 + $0x8] sm:$0xff]  ;;  %v976_v50 = vld [vmem:[#allocation2 + $0x100] sm:$0xff] }
 0x2e9   : > { %2232 = vrcp.f32 %v889_v51  ;;  %v978_v51 = vld [vmem:[#allocation2 + $0x110] sm:$0xff] }
 0x2f6   : > { %v2233_v52 = vpop.eup %2232 }
 0x2f7   : > { %v893_v53 = vmul.f32 %v2233_v52, %v2223_v28  ;;  %v891_v54 = vmul.f32 %v2233_v52, %v2217_v12  ;;  %v894_v57 = vmul.f32 %v2233_v52, %v2221_v27  ;;  %v892_v58 = vmul.f32 %v2233_v52, %v2219_v15  ;;  %v1001_v12 = vld [vmem:[#allocation2 + $0x1c8] sm:$0xff]  ;;  %v1003_v15 = vld [vmem:[#allocation2 + $0x1d8] sm:$0xff]  ;;  %v996_v28 = vld [vmem:[#allocation2 + $0x1a0] sm:$0xff] }
 0x2f8   : > { %v896_v61 = vmul.f32 %v2233_v52, %v2227_v33  ;;  %v895_v62 = vmul.f32 %v2233_v52, %v2225_v30  ;;  %v898_v1 = vmul.f32 %v2233_v52, %v2231_v39  ;;  %v897_v2 = vmul.f32 %v2233_v52, %v2229_v36  ;;  %1032 = vmatprep.subr.mxu0 %v1001_v12  ;;  %v999_v27 = vld [vmem:[#allocation2 + $0x1b8] sm:$0xff]  ;;  %v993_v30 = vld [vmem:[#allocation2 + $0x188] sm:$0xff]  ;;  %v994_v33 = vld [vmem:[#allocation2 + $0x190] sm:$0xff] }
 0x2f9   : > { %v905_v55 = vsel %vm823_vm1, %v893_v53, 0.0  ;;  %v899_v56 = vsel %vm823_vm1, %v891_v54, 0.0  ;;  %v908_v59 = vsel %vm823_vm1, %v894_v57, 0.0  ;;  %v902_v60 = vsel %vm823_vm1, %v892_v58, 0.0  ;;  %1103 = vmatprep.subr.mxu1 %v1003_v15  ;;  %1033 = vmatpush1.msra.mxu0 %v1000_v16  ;;  %v988_v36 = vld [vmem:[#allocation2 + $0x160] sm:$0xff]  ;;  %v987_v39 = vld [vmem:[#allocation2 + $0x158] sm:$0xff] }
 0x2fa   : > { %906 = vadd.xlane.f32.xlu1 %v905_v55  ;;  %900 = vadd.xlane.f32.xlu0 %v899_v56  ;;  %v914_v63 = vsel %vm823_vm1, %v896_v61, 0.0  ;;  %v911_v0 = vsel %vm823_vm1, %v895_v62, 0.0  ;;  %v920_v7 = vsel %vm823_vm1, %v898_v1, 0.0  ;;  %v917_v8 = vsel %vm823_vm1, %v897_v2, 0.0  ;;  %v973_v52 = vld [vmem:[#allocation2 + $0xe8] sm:$0xff]  ;;  %v975_v53 = vld [vmem:[#allocation2 + $0xf8] sm:$0xff] }
 0x2fb   : > { %1104 = vmatpush1.msra.mxu1 %v1002_v21  ;;  %1034 = vmatprep.subr.mxu0 %v997_v23  ;;  %v972_v54 = vld [vmem:[#allocation2 + $0xe0] sm:$0xff]  ;;  %v974_v55 = vld [vmem:[#allocation2 + $0xf0] sm:$0xff]  ;;  %v969_v56 = vld [vmem:[#allocation2 + $0xc8] sm:$0xff]  ;;  %v2331_v1 = vmov 1  }
 0x2fc   : > { %1105 = vmatprep.subr.mxu1 %v999_v27  ;;  %1035 = vmatpush1.msra.mxu0 %v996_v28  ;;  %v971_v57 = vld [vmem:[#allocation2 + $0xd8] sm:$0xff]  ;;  %v968_v58 = vld [vmem:[#allocation2 + $0xc0] sm:$0xff]  ;;  %v965_v61 = vld [vmem:[#allocation2 + $0xa8] sm:$0xff] }
 0x2fd   : > { %1106 = vmatpush1.msra.mxu1 %v998_v29  ;;  %1036 = vmatprep.subr.mxu0 %v993_v30  ;;  %v967_v62 = vld [vmem:[#allocation2 + $0xb8] sm:$0xff]  ;;  %v961_v2 = vld [vmem:[#allocation2 + $0x88] sm:$0xff]  ;;  %v956_v12 = vld [vmem:[#allocation2 + $0x60] sm:$0xff] }
 0x2fe   : > { %909 = vadd.xlane.f32.xlu1 %v908_v59  ;;  %903 = vadd.xlane.f32.xlu0 %v902_v60  ;;  %v970_v59 = vld [vmem:[#allocation2 + $0xd0] sm:$0xff]  ;;  %v2659_v60 = vld [vmem:[%s3146_s8] sm:$0xff]  ;;  %v953_v16 = vld [vmem:[#allocation2 + $0x48] sm:$0xff] }
 0x2ff   : > { %1107 = vmatprep.subr.mxu1 %v995_v31  ;;  %1037 = vmatpush1.msra.mxu0 %v992_v32  ;;  %v958_v15 = vld [vmem:[#allocation2 + $0x70] sm:$0xff]  ;;  %v955_v21 = vld [vmem:[#allocation2 + $0x58] sm:$0xff]  ;;  %v952_v23 = vld [vmem:[#allocation2 + $0x40] sm:$0xff] }
 0x300   : > { %1108 = vmatpush1.msra.mxu1 %v994_v33  ;;  %1038 = vmatprep.subr.mxu0 %v989_v34  ;;  %v954_v27 = vld [vmem:[#allocation2 + $0x50] sm:$0xff]  ;;  %v949_v28 = vld [vmem:[#allocation2 + $0x28] sm:$0xff]  ;;  %v951_v29 = vld [vmem:[#allocation2 + $0x38] sm:$0xff] }
 0x301   : > { %1109 = vmatprep.subr.mxu1 %v991_v35  ;;  %1039 = vmatpush1.msra.mxu0 %v988_v36  ;;  %v948_v30 = vld [vmem:[#allocation2 + $0x20] sm:$0xff]  ;;  %v950_v31 = vld [vmem:[#allocation2 + $0x30] sm:$0xff]  ;;  %v945_v32 = vld [vmem:[#allocation2 + $0x8] sm:$0xff]  ;;  %v2332_v36 = vmov 0.0  }
 0x302   : > { %915 = vadd.xlane.f32.xlu1 %v914_v63  ;;  %912 = vadd.xlane.f32.xlu0 %v911_v0  ;;  %v964_v63 = vld [vmem:[#allocation2 + $0xa0] sm:$0xff]  ;;  %v966_v0 = vld [vmem:[#allocation2 + $0xb0] sm:$0xff]  ;;  %v947_v33 = vld [vmem:[#allocation2 + $0x18] sm:$0xff] }
 0x303   : > { %1110 = vmatpush1.msra.mxu1 %v990_v37  ;;  %1040 = vmatprep.subr.mxu0 %v985_v38  ;;  %v944_v34 = vld [vmem:[#allocation2] sm:$0xff]  ;;  %v946_v35 = vld [vmem:[#allocation2 + $0x10] sm:$0xff]  ;;  %v2678_v37 = vld [vmem:[%s3146_s8 + $0x28] sm:$0xff] }
 0x304   : > { %1111 = vmatprep.subr.mxu1 %v987_v39  ;;  %1041 = vmatpush1.msra.mxu0 %v984_v40  ;;  %v1207_v38 = vld [vmem:[%s3146_s8 + $0x18] sm:$0xff]  ;;  %v2688_v39 = vld [vmem:[%s3146_s8 + $0x40] sm:$0xff] }
 0x305   : > { %1112 = vmatpush1.msra.mxu1 %v986_v41  ;;  %1042 = vmatprep.subr.mxu0 %v981_v42  ;;  %v2694_v40 = vld [vmem:[%s3146_s8 + $0x58] sm:$0xff]  ;;  %v1208_v41 = vld [vmem:[%s3146_s8 + $0x20] sm:$0xff] }
 0x306   : > { %921 = vadd.xlane.f32.xlu1 %v920_v7  ;;  %918 = vadd.xlane.f32.xlu0 %v917_v8  ;;  %v957_v7 = vld [vmem:[#allocation2 + $0x68] sm:$0xff]  ;;  %v959_v8 = vld [vmem:[#allocation2 + $0x78] sm:$0xff] }
 0x307   : > { %1113 = vmatprep.subr.mxu1 %v983_v43  ;;  %1043 = vmatpush1.msra.mxu0 %v980_v44  ;;  %v2708_v42 = vld [vmem:[%s3146_s8 + $0x38] sm:$0xff]  ;;  %v2715_v43 = vld [vmem:[%s3146_s8 + $0x50] sm:$0xff]  ;;  %v2722_v44 = vld [vmem:[%s3146_s8 + $0x68] sm:$0xff] }
 0x308   : > { %1114 = vmatpush1.msra.mxu1 %v982_v45  ;;  %1044 = vmatprep.subr.mxu0 %v977_v46  ;;  %v2333_v45 = vmov 3   ;;  %v1210_v46 = vld [vmem:[%s3146_s8 + $0x30] sm:$0xff] }
 0x309   : > { %1115 = vmatprep.subr.mxu1 %v979_v47  ;;  %1045 = vmatpush1.msra.mxu0 %v976_v50  ;;  %v2737_v47 = vld [vmem:[%s3146_s8 + $0x48] sm:$0xff]  ;;  %v2751_v50 = vld [vmem:[%s3146_s8 + $0x78] sm:$0xff] }
 0x30a   : > { %1116 = vmatpush1.msra.mxu1 %v978_v51  ;;  %1046 = vmatprep.subr.mxu0 %v973_v52  ;;  %v2772_v51 = vld [vmem:[%s3146_s8 + $0x70] sm:$0xff] }
 0x30b   : > { %1117 = vmatprep.subr.mxu1 %v975_v53  ;;  %1047 = vmatpush1.msra.mxu0 %v972_v54 }
 0x30c   : > { %1118 = vmatpush1.msra.mxu1 %v974_v55  ;;  %1048 = vmatprep.subr.mxu0 %v969_v56 }
 0x30d   : > { %1119 = vmatprep.subr.mxu1 %v971_v57  ;;  %1049 = vmatpush1.msra.mxu0 %v968_v58 }
 0x30e   : > { %1120 = vmatpush1.msra.mxu1 %v970_v59  ;;  %1050 = vmatprep.subr.mxu0 %v965_v61 }
 0x30f   : > { %1121 = vmatprep.subr.mxu1 %v967_v62  ;;  %1051 = vmatpush1.msra.mxu0 %v964_v63 }
 0x310   : > { %1122 = vmatpush1.msra.mxu1 %v966_v0  ;;  %1052 = vmatprep.subr.mxu0 %v961_v2 }
 0x311   : > { %1123 = vmatprep.subr.mxu1 %v963_v3  ;;  %1053 = vmatpush1.msra.mxu0 %v960_v4 }
 0x312   : > { %1124 = vmatpush1.msra.mxu1 %v962_v5  ;;  %1054 = vmatprep.subr.mxu0 %v957_v7 }
 0x313   : > { %1125 = vmatprep.subr.mxu1 %v959_v8  ;;  %1055 = vmatpush1.msra.mxu0 %v956_v12 }
 0x314   : > { %1126 = vmatpush1.msra.mxu1 %v958_v15  ;;  %1056 = vmatprep.subr.mxu0 %v953_v16 }
 0x315   : > { %1127 = vmatprep.subr.mxu1 %v955_v21  ;;  %1057 = vmatpush1.msra.mxu0 %v952_v23 }
 0x316   : > { %1128 = vmatpush1.msra.mxu1 %v954_v27  ;;  %1058 = vmatprep.subr.mxu0 %v949_v28 }
 0x317   : > { %1227 = vperm.xlu1 %2161, %v2653_v48   ;;  %1129 = vmatprep.subr.mxu1 %v951_v29 }
 0x318   : > { %1059 = vmatpush1.msra.mxu0 %v948_v30  ;;  %1130 = vmatpush1.msra.mxu1 %v950_v31 }
 0x319   : > { %1060 = vmatprep.subr.mxu0 %v945_v32  ;;  %1131 = vmatprep.subr.mxu1 %v947_v33 }
 0x31a   : > { %1061 = vmatpush1.msra.mxu0 %v944_v34  ;;  %1094 = vmatprep.mubr.f32.mxu0 %v2332_v36 }
 0x31b   : > { %2162 = vset.pattern.permute.xlu1 %v2331_v1  ;;  %1132 = vmatpush1.msra.mxu1 %v946_v35 }
 0x31c   : > { %1337 = vperm.xlu1 %2162, %v2659_v60   ;;  %1445 = vperm.xlu0 %2171, %v2666_v11  }
 0x31d   : > { %1165 = vmatprep.mubr.f32.mxu1 %v2332_v36 }
 0x320   : > { %2163 = vset.pattern.permute.xlu1 %v2329_v26  ;;  %1457 = vperm.xlu0 %2171, %v2678_v37  }
 0x321   : > { %1232 = vperm.xlu1 %2163, %v2666_v11  }
 0x324   : > { %1469 = vperm.xlu0 %2171, %v2688_v39  }
 0x325   : > { %2164 = vset.pattern.permute.xlu1 %v2331_v1 }
 0x326   : > { %1341 = vperm.xlu1 %2164, %v2653_v48  }
 0x328   : > { %1481 = vperm.xlu0 %2171, %v2694_v40  }
 0x32a   : > { %2165 = vset.pattern.permute.xlu1 %v2330_v49 }
 0x32b   : > { %1437 = vperm.xlu1 %2165, %v2659_v60  }
 0x32c   : > { %2196 = vset.pattern.permute.xlu0 %v2331_v1 }
 0x32d   : > { %1353 = vperm.xlu0 %2196, %v1208_v41  }
 0x32f   : > { %2166 = vset.pattern.permute.xlu1 %v2329_v26 }
 0x330   : > { %1237 = vperm.xlu1 %2166, %v1207_v38  }
 0x331   : > { %1365 = vperm.xlu0 %2196, %v2708_v42  }
 0x334   : > { %2167 = vset.pattern.permute.xlu1 %v2331_v1 }
 0x335   : > { %1345 = vperm.xlu1 %2167, %v2666_v11   ;;  %1377 = vperm.xlu0 %2196, %v2715_v43  }
 0x339   : > { %2168 = vset.pattern.permute.xlu1 %v2330_v49  ;;  %1389 = vperm.xlu0 %2196, %v2722_v44  }
 0x33a   : > { %1441 = vperm.xlu1 %2168, %v2653_v48  }
 0x33d   : > { %2199 = vset.pattern.permute.xlu0 %v2329_v26 }
 0x33e   : > { %2169 = vset.pattern.permute.xlu1 %v2329_v26  ;;  %1222 = vperm.xlu0 %2199, %v2659_v60  }
 0x33f   : > { %1242 = vperm.xlu1 %2169, %v1208_v41  }
 0x342   : > { %1252 = vperm.xlu0 %2199, %v1210_v46  }
 0x343   : > { %2170 = vset.pattern.permute.xlu1 %v2331_v1 }
 0x344   : > { %1349 = vperm.xlu1 %2170, %v1207_v38  }
 0x346   : > { %1267 = vperm.xlu0 %2199, %v2737_v47  }
 0x348   : > { %2172 = vset.pattern.permute.xlu1 %v2333_v45 }
 0x349   : > { %1541 = vperm.xlu1 %2172, %v2653_v48   ;;  %v2744_v48 = vld [vmem:[%s3146_s8 + $0x60] sm:$0xff] }
 0x34a   : > { %1282 = vperm.xlu0 %2199, %v2744_v48  }
 0x34d   : > { %2173 = vset.pattern.permute.xlu1 %v2329_v26 }
 0x34e   : > { %1247 = vperm.xlu1 %2173, %v2678_v37   ;;  %1297 = vperm.xlu0 %2199, %v2751_v50  }
 0x352   : > { %2174 = vset.pattern.permute.xlu1 %v2330_v49  ;;  %2202 = vset.pattern.permute.xlu0 %v2333_v45 }
 0x353   : > { %1449 = vperm.xlu1 %2174, %v1207_v38   ;;  %1537 = vperm.xlu0 %2202, %v2659_v60  }
 0x357   : > { %2175 = vset.pattern.permute.xlu1 %v2333_v45  ;;  %1549 = vperm.xlu0 %2202, %v1207_v38  }
 0x358   : > { %1545 = vperm.xlu1 %2175, %v2666_v11  }
 0x35b   : > { %1561 = vperm.xlu0 %2202, %v1210_v46  }
 0x35c   : > { %2176 = vset.pattern.permute.xlu1 %v2331_v1 }
 0x35d   : > { %1357 = vperm.xlu1 %2176, %v2678_v37  }
 0x35f   : > { %1573 = vperm.xlu0 %2202, %v2737_v47  }
 0x361   : > { %2177 = vset.pattern.permute.xlu1 %v2330_v49 }
 0x362   : > { %1453 = vperm.xlu1 %2177, %v1208_v41  }
 0x363   : > { %1585 = vperm.xlu0 %2202, %v2744_v48  }
 0x366   : > { %2178 = vset.pattern.permute.xlu1 %v2329_v26 }
 0x367   : > { %1257 = vperm.xlu1 %2178, %v2708_v42   ;;  %1589 = vperm.xlu0 %2202, %v2722_v44  }
 0x36b   : > { %2179 = vset.pattern.permute.xlu1 %v2331_v1  ;;  %1593 = vperm.xlu0 %2202, %v2772_v51  }
 0x36c   : > { %1361 = vperm.xlu1 %2179, %v1210_v46  }
 0x370   : > { %2180 = vset.pattern.permute.xlu1 %v2333_v45 }
 0x371   : > { %1553 = vperm.xlu1 %2180, %v1208_v41  }
 0x375   : > { %2181 = vset.pattern.permute.xlu1 %v2329_v26 }
 0x376   : > { %1262 = vperm.xlu1 %2181, %v2688_v39  }
 0x37a   : > { %2182 = vset.pattern.permute.xlu1 %v2330_v49 }
 0x37b   : > { %1461 = vperm.xlu1 %2182, %v1210_v46  }
 0x37f   : > { %2183 = vset.pattern.permute.xlu1 %v2333_v45 }
 0x380   : > { %1557 = vperm.xlu1 %2183, %v2678_v37  }
 0x383   : > { %v907_v52 = vpop.xlane.xlu1 %906  ;;  %v901_v53 = vpop.xlane.xlu0 %900 }
 0x384   : > { %2184 = vset.pattern.permute.xlu1 %v2331_v1  ;;  %v923_v56 = vmul.f32 %v901_v53, %v2600_v9  ;;  %v925_v58 = vmul.f32 %v907_v52, %v2606_v13 }
 0x385   : > { %1369 = vperm.xlu1 %2184, %v2688_v39  }
 0x387   : > { %v910_v54 = vpop.xlane.xlu1 %909  ;;  %v904_v55 = vpop.xlane.xlu0 %903 }
 0x388   : > { %v924_v57 = vmul.f32 %v904_v55, %v2602_v10  ;;  %v926_v62 = vmul.f32 %v910_v54, %v2608_v14 }
 0x389   : > { %2185 = vset.pattern.permute.xlu1 %v2330_v49 }
 0x38a   : > { %v931_v59 = vadd.f32 %v924_v57, %v923_v56  ;;  %1465 = vperm.xlu1 %2185, %v2708_v42  }
 0x38b   : > { %v916_v60 = vpop.xlane.xlu1 %915  ;;  %v913_v61 = vpop.xlane.xlu0 %912 }
 0x38c   : > { %v932_v63 = vadd.f32 %v931_v59, %v925_v58  ;;  %v927_v2 = vmul.f32 %v913_v61, %v2612_v17  ;;  %v928_v10 = vmul.f32 %v916_v60, %v2614_v20  ;;  %v1010_v58 = vlaneseq }
 0x38e   : > { %v933_v0 = vadd.f32 %v932_v63, %v926_v62  ;;  %2186 = vset.pattern.permute.xlu1 %v2329_v26  ;;  %v1011_v61 = vshrl.u32 %v1010_v58, 7  ;;  %v1880_v58 = vld [vmem:[%s3147_s9] sm:$0xff]  }
 0x38f   : > { %v919_v9 = vpop.xlane.xlu0 %918  ;;  %1272 = vperm.xlu1 %2186, %v2715_v43   ;;  %v922_v13 = vpop.xlane.xlu1 %921 }
 0x390   : > { %v934_v3 = vadd.f32 %v933_v0, %v927_v2  ;;  %v929_v5 = vmul.f32 %v919_v9, %v2618_v24  ;;  %v930_v14 = vmul.f32 %v922_v13, %v2620_v25  ;;  %v1012_v63 = vsub.s32 0, %v1011_v61  ;;  %v1008_v0 = vld [vmem:[%s3145_s7] sm:$0xf] }
 0x391   : > { %v1016_v9 = vsub.s32 1, %v1011_v61  ;;  %v1024_v13 = vsub.s32 3, %v1011_v61 }
 0x392   : > { %v935_v4 = vadd.f32 %v934_v3, %v928_v10  ;;  %v1013_v10 = vrot.slane %v1008_v0, %v1012_v63  ;;  %v1020_v3 = vsub.s32 2, %v1011_v61 }
 0x393   : > { %2187 = vset.pattern.permute.xlu1 %v2331_v1  ;;  %v2803_v25 = vpop.permute.xlu1 %1227 }
 0x394   : > { %v936_v7 = vadd.f32 %v935_v4, %v929_v5  ;;  %1373 = vperm.xlu1 %2187, %v2737_v47   ;;  %v1017_v5 = vrot.slane %v1008_v0, %v1016_v9 }
 0x396   : > { %v937_v17 = vadd.f32 %v936_v7, %v930_v14 }
 0x397   : > { %v2807_v16 = vpop.permute.xlu1 %1337 }
 0x398   : > { %v938_v8 = vrot.slane %v937_v17, 4  ;;  %2188 = vset.pattern.permute.xlu1 %v2333_v45 }
 0x399   : > { %1565 = vperm.xlu1 %2188, %v2708_v42  }
 0x39a   : > { %v939_v11 = vadd.f32 %v938_v8, %v937_v17 }
 0x39c   : > { %v940_v20 = vrot.slane %v939_v11, 2  ;;  %v2811_v21 = vpop.permute.xlu1 %1232 }
 0x39d   : > { %2189 = vset.pattern.permute.xlu1 %v2329_v26 }
 0x39e   : > { %v941_v12 = vadd.f32 %v940_v20, %v939_v11  ;;  %1277 = vperm.xlu1 %2189, %v2694_v40   ;;  %v1021_v11 = vrot.slane %v1008_v0, %v1020_v3 }
 0x3a0   : > { %v942_v24 = vrot.slane %v941_v12, 1 }
 0x3a2   : > { %v943_v15 = vadd.f32 %v942_v24, %v941_v12  ;;  %2190 = vset.pattern.permute.xlu1 %v2330_v49  ;;  %v1025_v12 = vrot.slane %v1008_v0, %v1024_v13  ;;  %v1911_v0 = vld [vmem:[%s3147_s9 + $0x8] sm:$0xff]   ;;  %v1882_v13 = vunpack.c.h.bf16 %v1880_v58 }
 0x3a3   : > { %1473 = vperm.xlu1 %2190, %v2737_v47  }
 0x3a4   : > { %1095 = vmatmul.mubr.f32.vlgmr.msra.gmra.mxu0 %v943_v15  ;;  %1166 = vmatmul.mubr.f32.vlgmr.msra.gmra.mxu1 %v943_v15 }
 0x3a5   : > { %2094 = vmatprep.mubr.bf16.mxu0 %v2484_v6  ;;  %v2816_v6 = vpop.permute.xlu1 %1341 }
 0x3a7   : > { %2191 = vset.pattern.permute.xlu1 %v2333_v45 }
 0x3a8   : > { %1569 = vperm.xlu1 %2191, %v2688_v39  }
 0x3a9   : > { %v2821_v23 = vpop.permute.xlu1 %1437 }
 0x3ac   : > { %2192 = vset.pattern.permute.xlu1 %v2331_v1 }
 0x3ad   : > { %1381 = vperm.xlu1 %2192, %v2694_v40   ;;  %v2825_v27 = vpop.permute.xlu1 %1237 }
 0x3b1   : > { %2193 = vset.pattern.permute.xlu1 %v2330_v49  ;;  %v2829_v28 = vpop.permute.xlu1 %1345 }
 0x3b2   : > { %1477 = vperm.xlu1 %2193, %v2715_v43  }
 0x3b5   : > { %v2833_v29 = vpop.permute.xlu1 %1441 }
 0x3b6   : > { %2194 = vset.pattern.permute.xlu1 %v2329_v26 }
 0x3b7   : > { %1287 = vperm.xlu1 %2194, %v2722_v44  }
 0x3bb   : > { %2195 = vset.pattern.permute.xlu1 %v2331_v1 }
 0x3bc   : > { %1385 = vperm.xlu1 %2195, %v2744_v48  }
 0x3c0   : > { %2197 = vset.pattern.permute.xlu1 %v2333_v45 }
 0x3c1   : > { %1577 = vperm.xlu1 %2197, %v2715_v43  }
 0x3c5   : > { %2198 = vset.pattern.permute.xlu1 %v2329_v26  ;;  %v2838_v26 = vpop.permute.xlu1 %1242 }
 0x3c6   : > { %1292 = vperm.xlu1 %2198, %v2772_v51  }
 0x3c9   : > { %v2843_v30 = vpop.permute.xlu1 %1349 }
 0x3ca   : > { %2200 = vset.pattern.permute.xlu1 %v2330_v49 }
 0x3cb   : > { %1485 = vperm.xlu1 %2200, %v2744_v48  }
 0x3cd   : > { %v2847_v31 = vpop.permute.xlu1 %1541 }
 0x3cf   : > { %2201 = vset.pattern.permute.xlu1 %v2333_v45 }
 0x3d0   : > { %1581 = vperm.xlu1 %2201, %v2694_v40   ;;  %v2872_v40 = vpop.permute.xlu0 %1445 }
 0x3d1   : > { %v2850_v32 = vpop.permute.xlu1 %1247 }
 0x3d4   : > { %2203 = vset.pattern.permute.xlu1 %v2331_v1  ;;  %v2876_v42 = vpop.permute.xlu0 %1457 }
 0x3d5   : > { %1393 = vperm.xlu1 %2203, %v2772_v51   ;;  %v2854_v33 = vpop.permute.xlu1 %1449 }
 0x3d9   : > { %2204 = vset.pattern.permute.xlu1 %v2330_v49 }
 0x3da   : > { %1489 = vperm.xlu1 %2204, %v2722_v44   ;;  %v2880_v44 = vpop.permute.xlu0 %1469 }
 0x3de   : > { %2205 = vset.pattern.permute.xlu1 %v2331_v1  ;;  %v2856_v1 = vpop.permute.xlu1 %1545  ;;  %v2884_v46 = vpop.permute.xlu0 %1481 }
 0x3df   : > { %1397 = vperm.xlu1 %2205, %v2751_v50  }
 0x3e2   : > { %v2858_v34 = vpop.permute.xlu1 %1357  ;;  %v2888_v48 = vpop.permute.xlu0 %1353 }
 0x3e3   : > { %2206 = vset.pattern.permute.xlu1 %v2330_v49 }
 0x3e4   : > { %1493 = vperm.xlu1 %2206, %v2772_v51  }
 0x3e6   : > { %v2860_v35 = vpop.permute.xlu1 %1453  ;;  %v2892_v51 = vpop.permute.xlu0 %1365 }
 0x3e8   : > { %1497 = vperm.xlu1 %2206, %v2751_v50  }
 0x3ea   : > { %v2862_v49 = vpop.permute.xlu1 %1257  ;;  %v2896_v53 = vpop.permute.xlu0 %1377 }
 0x3ec   : > { %2207 = vset.pattern.permute.xlu1 %v2333_v45 }
 0x3ed   : > { %1597 = vperm.xlu1 %2207, %v2751_v50  }
 0x3ee   : > { %v2864_v36 = vpop.permute.xlu1 %1361  ;;  %v2900_v55 = vpop.permute.xlu0 %1389 }
 0x3ef   : > { %3161 = vst [vmem:[#allocation11_spill] sm:$0xff] %v2900_v55 }
 0x3f2   : > { %v2866_v37 = vpop.permute.xlu1 %1553  ;;  %v1223_v57 = vpop.permute.xlu0 %1222 }
 0x3f6   : > { %v2868_v38 = vpop.permute.xlu1 %1262  ;;  %v2906_v60 = vpop.permute.xlu0 %1252 }
 0x3fa   : > { %v2870_v39 = vpop.permute.xlu1 %1461  ;;  %v2913_v2 = vpop.permute.xlu0 %1267 }
 0x3fe   : > { %v2874_v41 = vpop.permute.xlu1 %1557  ;;  %v2917_v17 = vpop.permute.xlu0 %1282 }
 0x402   : > { %v2878_v43 = vpop.permute.xlu1 %1369  ;;  %v2928_v55 = vpop.permute.xlu0 %1297 }
 0x403   : > { %3162 = vst [vmem:[#allocation12_spill] sm:$0xff] %v2928_v55 }
 0x406   : > { %v2882_v45 = vpop.permute.xlu1 %1465 }
 0x40a   : > { %v2886_v47 = vpop.permute.xlu1 %1272 }
 0x40f   : > { %v2890_v50 = vpop.permute.xlu1 %1373 }
 0x414   : > { %v2894_v52 = vpop.permute.xlu1 %1565 }
 0x419   : > { %v2898_v54 = vpop.permute.xlu1 %1277 }
 0x41e   : > { %v2902_v56 = vpop.permute.xlu1 %1473 }
 0x423   : > { %v2904_v59 = vpop.permute.xlu1 %1569 }
 0x428   : > { %v2908_v62 = vpop.permute.xlu1 %1381 }
 0x42d   : > { %v2915_v4 = vpop.permute.xlu1 %1477 }
 0x432   : > { %v2926_v9 = vpop.permute.xlu1 %1287 }
 0x464   : > { %v1096_v14 = vpop.f32.mrf.mxu0  ;;  %v1167_v7 = vpop.f32.mrf.mxu1 }
 0x465   : > { %v1097_v8 = vadd.f32 %v1096_v14, %v1013_v10  ;;  %v1168_v61 = vadd.f32 %v1167_v7, %v1021_v11  ;;  %v1881_v10 = vunpack.c.l.bf16 %v1880_v58 }
 0x466   : > { %v1098_v20 = vpop.f32.mrf.mxu0  ;;  %v1169_v15 = vpop.f32.mrf.mxu1 }
 0x467   : > { %v1099_v24 = vadd.f32 %v1098_v20, %v1017_v5  ;;  %v2922_v22 = vrot.slane %v1097_v8, %v1012_v63  ;;  %v1170_v18 = vadd.f32 %v1169_v15, %v1025_v12  ;;  %v2933_v3 = vrot.slane %v1168_v61, %v1012_v63  ;;  %v1538_v15 = vpop.permute.xlu0 %1537 }
 0x468   : > { %v1885_v12 = vunpack.c.l.bf16 %v1911_v0 }
 0x469   : > { %v2924_v19 = vrot.slane %v1099_v24, %v1012_v63  ;;  %v1304_v5 = vmul.f32 %v2922_v22, %v1223_v57  ;;  %v2938_v7 = vrot.slane %v1170_v18, %v1012_v63  ;;  %v1305_v11 = vmul.f32 %v2922_v22, %v2803_v25  ;;  %v2944_v24 = vpop.permute.xlu1 %1385 }
 0x46a   : > { %v1504_v57 = vmul.f32 %v2933_v3, %v2821_v23  ;;  %v1306_v18 = vmul.f32 %v2922_v22, %v2811_v21  ;;  %v1886_v63 = vunpack.c.h.bf16 %v1911_v0 }
 0x46b   : > { %v1404_v14 = vmul.f32 %v2924_v19, %v2807_v16  ;;  %v1320_v8 = vadd.f32 %v1881_v10, %v1304_v5  ;;  %v1405_v20 = vmul.f32 %v2924_v19, %v2816_v6  ;;  %v1321_v58 = vadd.f32 %v1882_v13, %v1305_v11  ;;  %v1912_v16 = vld [vmem:[%s3147_s9 + $0x10] sm:$0xff]  }
 0x46c   : > { %v1604_v25 = vmul.f32 %v2938_v7, %v1538_v15  ;;  %v1406_v6 = vmul.f32 %v2924_v19, %v2829_v28  ;;  %v1322_v23 = vadd.f32 %v1885_v12, %v1306_v18  ;;  %v1307_v13 = vmul.f32 %v2922_v22, %v2825_v27 }
 0x46d   : > { %v1420_v61 = vadd.f32 %v1404_v14, %v1320_v8  ;;  %v1421_v5 = vadd.f32 %v1405_v20, %v1321_v58  ;;  %v1505_v14 = vmul.f32 %v2933_v3, %v2833_v29  ;;  %v1407_v21 = vmul.f32 %v2924_v19, %v2843_v30  ;;  %v2964_v0 = vpop.permute.xlu1 %1577 }
 0x46e   : > { %v1889_v8 = vunpack.c.l.bf16 %v1912_v16  ;;  %v1422_v15 = vadd.f32 %v1406_v6, %v1322_v23  ;;  %v1308_v28 = vmul.f32 %v2922_v22, %v2838_v26  ;;  %v1323_v20 = vadd.f32 %v1886_v63, %v1307_v13 }
 0x46f   : > { %v1520_v10 = vadd.f32 %v1504_v57, %v1420_v61  ;;  %v1521_v55 = vadd.f32 %v1505_v14, %v1421_v5  ;;  %v1605_v29 = vmul.f32 %v2938_v7, %v2847_v31  ;;  %v1506_v27 = vmul.f32 %v2933_v3, %v2872_v40  ;;  %v1550_v14 = vpop.permute.xlu0 %1549 }
 0x470   : > { %v1324_v12 = vadd.f32 %v1889_v8, %v1308_v28  ;;  %v1408_v30 = vmul.f32 %v2924_v19, %v2888_v48  ;;  %v1890_v61 = vunpack.c.h.bf16 %v1912_v16  ;;  %v1423_v18 = vadd.f32 %v1407_v21, %v1323_v20 }
 0x471   : > { %v1620_v11 = vadd.f32 %v1604_v25, %v1520_v10  ;;  %v1621_v57 = vadd.f32 %v1605_v29, %v1521_v55  ;;  %v1522_v58 = vadd.f32 %v1506_v27, %v1422_v15  ;;  %v1309_v26 = vmul.f32 %v2922_v22, %v2850_v32  ;;  %v1913_v25 = vld [vmem:[%s3147_s9 + $0x18] sm:$0xff]   ;;  %v2981_v6 = vpop.permute.xlu1 %1292 }
 0x472   : > { %v1606_v31 = vmul.f32 %v2938_v7, %v2856_v1  ;;  %v1507_v40 = vmul.f32 %v2933_v3, %v2854_v33  ;;  %v1424_v48 = vadd.f32 %v1408_v30, %v1324_v12  ;;  %v1409_v55 = vmul.f32 %v2924_v19, %v2858_v34 }
 0x473   : > { %1636 = vxpose.xlu0.b32.start [1/16] %v1620_v11, 128  ;;  %v1893_v16 = vunpack.c.l.bf16 %v1913_v25  ;;  %v1325_v10 = vadd.f32 %v1890_v61, %v1309_v26  ;;  %v1310_v5 = vmul.f32 %v2922_v22, %v2906_v60  ;;  %v1508_v1 = vmul.f32 %v2933_v3, %v2860_v35  ;;  %v1914_v60 = vld [vmem:[%s3147_s9 + $0x20] sm:$0xff]  }
 0x474   : > { %v1622_v63 = vadd.f32 %v1606_v31, %v1522_v58  ;;  %v1523_v32 = vadd.f32 %v1507_v40, %v1423_v18  ;;  %v1607_v33 = vmul.f32 %v2938_v7, %v1550_v14  ;;  %v1410_v13 = vmul.f32 %v2924_v19, %v2864_v36  ;;  %v1562_v40 = vpop.permute.xlu0 %1561 }
 0x475   : > { %v1524_v23 = vadd.f32 %v1508_v1, %v1424_v48  ;;  %v1894_v21 = vunpack.c.h.bf16 %v1913_v25  ;;  %v1425_v8 = vadd.f32 %v1409_v55, %v1325_v10  ;;  %v1326_v11 = vadd.f32 %v1893_v16, %v1310_v5  ;;  %v2997_v28 = vpop.permute.xlu1 %1485 }
 0x476   : > { %v1623_v34 = vadd.f32 %v1607_v33, %v1523_v32  ;;  %v1311_v15 = vmul.f32 %v2922_v22, %v2862_v49  ;;  %v1608_v35 = vmul.f32 %v2938_v7, %v2866_v37  ;;  %v1509_v36 = vmul.f32 %v2933_v3, %v2876_v42 }
 0x477   : > { %1637 = vxpose.xlu0.b32.cont [2/16] %v1621_v57, 128  ;;  %v1411_v29 = vmul.f32 %v2924_v19, %v2892_v51  ;;  %v1897_v27 = vunpack.c.l.bf16 %v1914_v60  ;;  %v1426_v49 = vadd.f32 %v1410_v13, %v1326_v11  ;;  %v1312_v61 = vmul.f32 %v2922_v22, %v2868_v38 }
 0x478   : > { %v1624_v20 = vadd.f32 %v1608_v35, %v1524_v23  ;;  %v1525_v12 = vadd.f32 %v1509_v36, %v1425_v8  ;;  %v1327_v30 = vadd.f32 %v1894_v21, %v1311_v15  ;;  %v1609_v57 = vmul.f32 %v2938_v7, %v2874_v41  ;;  %v1915_v41 = vld [vmem:[%s3147_s9 + $0x28] sm:$0xff]   ;;  %v1916_v23 = vld [vmem:[%s3147_s9 + $0x30] sm:$0xff]  }
 0x479   : > { %v1510_v37 = vmul.f32 %v2933_v3, %v2870_v39  ;;  %v3011_v58 = vpop.permute.xlu1 %1581  ;;  %v1412_v42 = vmul.f32 %v2924_v19, %v2878_v43  ;;  %v1898_v51 = vunpack.c.h.bf16 %v1914_v60  ;;  %v1313_v18 = vmul.f32 %v2922_v22, %v2913_v2 }
 0x47a   : > { %v1625_v26 = vadd.f32 %v1609_v57, %v1525_v12  ;;  %v1427_v31 = vadd.f32 %v1411_v29, %v1327_v30  ;;  %v1328_v38 = vadd.f32 %v1897_v27, %v1312_v61  ;;  %v1610_v39 = vmul.f32 %v2938_v7, %v1562_v40  ;;  %v1917_v12 = vld [vmem:[%s3147_s9 + $0x38] sm:$0xff]  }
 0x47b   : > { %1638 = vxpose.xlu0.b32.cont [3/16] %v1622_v63, 128  ;;  %v1526_v25 = vadd.f32 %v1510_v37, %v1426_v49  ;;  %v1511_v48 = vmul.f32 %v2933_v3, %v2882_v45  ;;  %v1329_v43 = vadd.f32 %v1898_v51, %v1313_v18  ;;  %v1413_v55 = vmul.f32 %v2924_v19, %v2890_v50  ;;  %v3163_v18 = vld [vmem:[#allocation11_spill] sm:$0xff] }
 0x47c   : > { %v1901_v2 = vunpack.c.l.bf16 %v1915_v41  ;;  %v1428_v32 = vadd.f32 %v1412_v42, %v1328_v38  ;;  %v1314_v10 = vmul.f32 %v2922_v22, %v2886_v47  ;;  %v1611_v14 = vmul.f32 %v2938_v7, %v2894_v52 }
 0x47d   : > { %v1626_v16 = vadd.f32 %v1610_v39, %v1526_v25  ;;  %v1527_v63 = vadd.f32 %v1511_v48, %v1427_v31  ;;  %v1394_v5 = vpop.permute.xlu1 %1393  ;;  %v1512_v1 = vmul.f32 %v2933_v3, %v2880_v44  ;;  %v1429_v45 = vadd.f32 %v1413_v55, %v1329_v43  ;;  %v3164_v39 = vld [vmem:[#allocation12_spill] sm:$0xff] }
 0x47e   : > { %v1414_v33 = vmul.f32 %v2924_v19, %v2896_v53  ;;  %v1902_v50 = vunpack.c.h.bf16 %v1915_v41  ;;  %v1330_v47 = vadd.f32 %v1901_v2, %v1314_v10  ;;  %v1513_v52 = vmul.f32 %v2933_v3, %v2902_v56 }
 0x47f   : > { %1639 = vxpose.xlu0.b32.cont [4/16] %v1623_v34, 128  ;;  %v1627_v13 = vadd.f32 %v1611_v14, %v1527_v63  ;;  %v1528_v21 = vadd.f32 %v1512_v1, %v1428_v32  ;;  %v1315_v34 = vmul.f32 %v2922_v22, %v2898_v54  ;;  %v1612_v44 = vmul.f32 %v2938_v7, %v2904_v59  ;;  %v1574_v54 = vpop.permute.xlu0 %1573 }
 0x480   : > { %v1905_v53 = vunpack.c.l.bf16 %v1916_v23  ;;  %v1529_v11 = vadd.f32 %v1513_v52, %v1429_v45  ;;  %v1415_v15 = vmul.f32 %v2924_v19, %v2908_v62  ;;  %v1430_v35 = vadd.f32 %v1414_v33, %v1330_v47 }
 0x481   : > { %v1490_v8 = vpop.permute.xlu1 %1489  ;;  %v1628_v60 = vadd.f32 %v1612_v44, %v1528_v21  ;;  %v1331_v36 = vadd.f32 %v1902_v50, %v1315_v34  ;;  %v1613_v56 = vmul.f32 %v2938_v7, %v1574_v54  ;;  %v1514_v29 = vmul.f32 %v2933_v3, %v2915_v4 }
 0x482   : > { %v1906_v59 = vunpack.c.h.bf16 %v1916_v23  ;;  %v1317_v27 = vmul.f32 %v2922_v22, %v2926_v9  ;;  %v1416_v62 = vmul.f32 %v2924_v19, %v2944_v24  ;;  %v1614_v4 = vmul.f32 %v2938_v7, %v2964_v0 }
 0x483   : > { %1640 = vxpose.xlu0.b32.cont [5/16] %v1624_v20, 128  ;;  %v1316_v20 = vmul.f32 %v2922_v22, %v2917_v17  ;;  %v1629_v49 = vadd.f32 %v1613_v56, %v1529_v11  ;;  %v1530_v17 = vadd.f32 %v1514_v29, %v1430_v35  ;;  %v1431_v30 = vadd.f32 %v1415_v15, %v1331_v36  ;;  %v1586_v9 = vpop.permute.xlu0 %1585 }
 0x484   : > { %v1515_v37 = vmul.f32 %v2933_v3, %v2884_v46  ;;  %v1333_v42 = vadd.f32 %v1906_v59, %v1317_v27  ;;  %v1909_v51 = vunpack.c.l.bf16 %v1917_v12  ;;  %v1318_v24 = vmul.f32 %v2922_v22, %v2981_v6 }
 0x485   : > { %v1332_v61 = vadd.f32 %v1905_v53, %v1316_v20  ;;  %v1398_v57 = vpop.permute.xlu1 %1397  ;;  %v1630_v25 = vadd.f32 %v1614_v4, %v1530_v17  ;;  %v1615_v41 = vmul.f32 %v2938_v7, %v3011_v58  ;;  %v1516_v0 = vmul.f32 %v2933_v3, %v2997_v28 }
 0x486   : > { %v1531_v31 = vadd.f32 %v1515_v37, %v1431_v30  ;;  %v1910_v40 = vunpack.c.h.bf16 %v1917_v12  ;;  %v1319_v48 = vmul.f32 %v2922_v22, %v3164_v39  ;;  %v1334_v43 = vadd.f32 %v1909_v51, %v1318_v24  ;;  %v3165_v51 = vld [vmem:[#allocation8_spill] sm:$0xff]  ;;  %v3166_v24 = vld [vmem:[#allocation9_spill] sm:$0xff] }
 0x487   : > { %1641 = vxpose.xlu0.b32.cont [6/16] %v1625_v26, 128  ;;  %v1417_v26 = vmul.f32 %v2924_v19, %v3163_v18  ;;  %v1432_v38 = vadd.f32 %v1416_v62, %v1332_v61  ;;  %v1418_v55 = vmul.f32 %v2924_v19, %v1394_v5  ;;  %v1590_v63 = vpop.permute.xlu0 %1589  ;;  %v1517_v32 = vmul.f32 %v2933_v3, %v1490_v8  ;;  %v3167_v18 = vld [vmem:[#allocation10_spill] sm:$0xff] }
 0x488   : > { %v1631_v2 = vadd.f32 %v1615_v41, %v1531_v31  ;;  %v1616_v58 = vmul.f32 %v2938_v7, %v1586_v9  ;;  %v1419_v10 = vmul.f32 %v2924_v19, %v1398_v57  ;;  %v1335_v14 = vadd.f32 %v1910_v40, %v1319_v48 }
 0x489   : > { %v1494_v46 = vpop.permute.xlu1 %1493  ;;  %v1433_v6 = vadd.f32 %v1417_v26, %v1333_v42  ;;  %v1434_v1 = vadd.f32 %v1418_v55, %v1334_v43  ;;  %v1617_v22 = vmul.f32 %v2938_v7, %v1590_v63  ;;  %v1871_v26 = vld [vmem:[%s3148_s10] ss:$0 sm:$0xff] }
 0x48a   : > { %v1518_v50 = vmul.f32 %v2933_v3, %v1494_v46 }
 0x48b   : > { %1642 = vxpose.xlu0.b32.cont [7/16] %v1626_v16, 128  ;;  %v1532_v16 = vadd.f32 %v1516_v0, %v1432_v38  ;;  %v1533_v28 = vadd.f32 %v1517_v32, %v1433_v6  ;;  %v1594_v5 = vpop.permute.xlu0 %1593 }
 0x48c   : > { %v1534_v21 = vadd.f32 %v1518_v50, %v1434_v1  ;;  %v1618_v34 = vmul.f32 %v2938_v7, %v1594_v5 }
 0x48d   : > { %v1632_v45 = vadd.f32 %v1616_v58, %v1532_v16  ;;  %v1498_v33 = vpop.permute.xlu1 %1497  ;;  %v1633_v23 = vadd.f32 %v1617_v22, %v1533_v28 }
 0x48e   : > { %v1519_v47 = vmul.f32 %v2933_v3, %v1498_v33  ;;  %v1634_v44 = vadd.f32 %v1618_v34, %v1534_v21 }
 0x48f   : > { %1643 = vxpose.xlu0.b32.cont [8/16] %v1627_v13, 128  ;;  %v1435_v13 = vadd.f32 %v1419_v10, %v1335_v14 }
 0x491   : > { %v1598_v19 = vpop.permute.xlu1 %1597  ;;  %v1535_v52 = vadd.f32 %v1519_v47, %v1435_v13 }
 0x492   : > { %v1619_v8 = vmul.f32 %v2938_v7, %v1598_v19 }
 0x493   : > { %1644 = vxpose.xlu0.b32.cont [9/16] %v1628_v60, 128 }
 0x494   : > { %v1635_v53 = vadd.f32 %v1619_v8, %v1535_v52 }
 0x497   : > { %1645 = vxpose.xlu0.b32.cont [10/16] %v1629_v49, 128 }
 0x49b   : > { %1646 = vxpose.xlu0.b32.cont [11/16] %v1630_v25, 128 }
 0x49f   : > { %1647 = vxpose.xlu0.b32.cont [12/16] %v1631_v2, 128 }
 0x4a3   : > { %1648 = vxpose.xlu0.b32.cont [13/16] %v1632_v45, 128 }
 0x4a7   : > { %1649 = vxpose.xlu0.b32.cont [14/16] %v1633_v23, 128 }
 0x4ab   : > { %1650 = vxpose.xlu0.b32.cont [15/16] %v1634_v44, 128 }
 0x4af   : > { %1651 = vxpose.xlu0.b32.end [16/16] %v1635_v53, 128 }
 0x4ef   : > { %v1652_v11 = vpop.trf.xlu0 }
 0x4f3   : > { %v1653_v15 = vpop.trf.xlu0 }
 0x4f4   : > { %v1668_v60 = vpack.c.bf16 %v1653_v15, %v1652_v11 }
 0x4f7   : > { %v1654_v35 = vpop.trf.xlu0 }
 0x4fb   : > { %v1655_v36 = vpop.trf.xlu0 }
 0x4fc   : > { %v1669_v20 = vpack.c.bf16 %v1655_v36, %v1654_v35 }
 0x4ff   : > { %v1656_v54 = vpop.trf.xlu0 }
 0x503   : > { %v1657_v56 = vpop.trf.xlu0 }
 0x504   : > { %v1670_v42 = vpack.c.bf16 %v1657_v56, %v1656_v54 }
 0x507   : > { %v1658_v3 = vpop.trf.xlu0 }
 0x50b   : > { %v1659_v29 = vpop.trf.xlu0 }
 0x50c   : > { %v1671_v9 = vpack.c.bf16 %v1659_v29, %v1658_v3 }
 0x50f   : > { %v1660_v59 = vpop.trf.xlu0 }
 0x513   : > { %v1661_v27 = vpop.trf.xlu0 }
 0x514   : > { %v1672_v37 = vpack.c.bf16 %v1661_v27, %v1660_v59 }
 0x517   : > { %v1662_v62 = vpop.trf.xlu0 }
 0x51b   : > { %v1663_v12 = vpop.trf.xlu0 }
 0x51c   : > { %v1673_v4 = vpack.c.bf16 %v1663_v12, %v1662_v62 }
 0x51f   : > { %v1664_v49 = vpop.trf.xlu0 }
 0x523   : > { %v1665_v17 = vpop.trf.xlu0 }
 0x524   : > { %v1674_v57 = vpack.c.bf16 %v1665_v17, %v1664_v49 }
 0x527   : > { %v1666_v7 = vpop.trf.xlu0 }
 0x52b   : > { %v1667_v30 = vpop.trf.xlu0 }
 0x52c   : > { %v1675_v61 = vpack.c.bf16 %v1667_v30, %v1666_v7 }
 0x52e   : > { %2078 = vmatprep.subr.bf16.mxu0 %v1675_v61 }
 0x52f   : > { %2079 = vmatpush3.bf16.msra.mxu0 %v1675_v61 }
 0x530   : > { %2080 = vmatprep.subr.bf16.mxu0 %v1674_v57 }
 0x533   : > { %2081 = vmatpush3.bf16.msra.mxu0 %v1674_v57 }
 0x534   : > { %2082 = vmatprep.subr.bf16.mxu0 %v1673_v4 }
 0x537   : > { %2083 = vmatpush3.bf16.msra.mxu0 %v1673_v4 }
 0x538   : > { %2084 = vmatprep.subr.bf16.mxu0 %v1672_v37 }
 0x53b   : > { %2085 = vmatpush3.bf16.msra.mxu0 %v1672_v37 }
 0x53c   : > { %2086 = vmatprep.subr.bf16.mxu0 %v1671_v9 }
 0x53f   : > { %2087 = vmatpush3.bf16.msra.mxu0 %v1671_v9 }
 0x540   : > { %2088 = vmatprep.subr.bf16.mxu0 %v1670_v42 }
 0x543   : > { %2089 = vmatpush3.bf16.msra.mxu0 %v1670_v42 }
 0x544   : > { %2090 = vmatprep.subr.bf16.mxu0 %v1669_v20 }
 0x547   : > { %2091 = vmatpush3.bf16.msra.mxu0 %v1669_v20 }
 0x548   : > { %2092 = vmatprep.subr.bf16.mxu0 %v1668_v60 }
 0x54b   : > { %2093 = vmatpush3.bf16.msra.mxu0 %v1668_v60 }
 0x54e   : > { %2095 = vmatmul.mubr.bf16.vlgmr.msra.gmra.mxu0 %v3165_v51 }
 0x54f   : > { %2098 = vmatprep.mubr.bf16.mxu0 %v3166_v24 }
 0x556   : > { %2099 = vmatmul.mubr.bf16.gmra.mxu0 %v3167_v18 }
 0x60e   : > { %v2096_v25 = vpop.f32.mrf.mxu0 }
 0x60f   : > { %v1726_v31 = vadd.f32 %v2096_v25, %v1871_v26 }
 0x610   : > { %v1717_v38 = vpop.f32.mrf.mxu0 }
 0x611   : > { %1750 = vst [vmem:[%s394_s14 + $0x10] sm:$0xff] %v1726_v31  ;;  %v1718_v41 = vadd.f32 %v1871_v26, %v1717_v38 }
 0x612   : > { %v2097_v0 = vpop.f32.mrf.mxu0 }
 0x613   : > { %1748 = vst [vmem:[%s394_s14] sm:$0xff] %v1718_v41  ;;  %v1729_v46 = vadd.f32 %v2097_v0, %v1871_v26 }
 0x614   : > { %v1720_v40 = vpop.f32.mrf.mxu0 }
 0x615   : > { %1751 = vst [vmem:[%s394_s14 + $0x18] sm:$0xff] %v1729_v46  ;;  %v1721_v39 = vadd.f32 %v1871_v26, %v1720_v40 }
 0x616   : > { %v2100_v48 = vpop.f32.mrf.mxu0 }
 0x617   : > { %1749 = vst [vmem:[%s394_s14 + $0x8] sm:$0xff] %v1721_v39  ;;  %v1742_v43 = vadd.f32 %v2100_v48, %v1871_v26 }
 0x618   : > { %v1733_v6 = vpop.f32.mrf.mxu0 }
 0x619   : > { %1754 = vst [vmem:[%s394_s14 + $0x30] sm:$0xff] %v1742_v43  ;;  %v1734_v55 = vadd.f32 %v1871_v26, %v1733_v6 }
 0x61a   : > { %v2101_v2 = vpop.f32.mrf.mxu0 }
 0x61b   : > { %1752 = vst [vmem:[%s394_s14 + $0x20] sm:$0xff] %v1734_v55  ;;  %v1745_v16 = vadd.f32 %v2101_v2, %v1871_v26 }
 0x61c   : > { %v1736_v63 = vpop.f32.mrf.mxu0 }
 0x61d   : > { %1755 = vst [vmem:[%s394_s14 + $0x38] sm:$0xff] %v1745_v16  ;;  %v1737_v32 = vadd.f32 %v1871_v26, %v1736_v63 }
 0x61f   : > { %1753 = vst [vmem:[%s394_s14 + $0x28] sm:$0xff] %v1737_v32 }
 0x620   : > { %2273 = shalt.err (!%p2270_p0)
}
 0x621   : > { %s2274_s13 = scalar_lea.hbm %s3094_s6, 1024  ;;  %s2278_s25 = scalar_lea.hbm %s3149_s11, 2048 }
 0x622   : > { %p2275_p1 = scmp.ne.s32.totalorder %s3094_s6, %s2274_s13  ;;  %p2279_p4 = scmp.lt.s32.totalorder %s3094_s6, %s3149_s11 }
 0x623   : > { %p2280_p7 = scmp.lt.s32.totalorder %s2278_s25, %s2274_s13 }
 0x624   : > { %p2276_p2 = pnand %p2275_p1, %p2435_p5 }
 0x625   : > { %p2281_p8 = por %p2280_p7, %p2279_p4 }
 0x626   : > { %p2277_p3 = pneg %p2276_p2 }
 0x628   : > { %p2282_p6 = pnand %p2281_p8, %p2277_p3 }
 0x62a   : > { %2285 = shalt.err (!%p2282_p6)
}
 0x62b   : > { %s2335_s21 = smov 128   ;;  %s2336_s29 = smov 8  }
 0x62c   : > { %2106 = dma.vmem_to_hbm [thread:$0]  (%p2435_p5), %s3089_s15, 1024, %s3094_s6, %s3098_s24, %s2335_s21, %s2335_s21, %s2336_s29  }
 0x62d PF: > { %p2118_p9 = scmp.ge.s32.totalorder %s2324_s20, 2  ;;  %s1785_s12 = sand.u32 1, %s2312_s17  }
 0x62e   : > { %p3168_p10 = scmp.ne.s32.totalorder %s3155_s28, 0  ;;  %s1786_s13 = scalar_lea.sflag [#allocation4], %s1785_s12 }
 0x630   : > { %p2113_p11 = pnand %p2118_p9, %p3168_p10 }
 0x632   : > { %p2114_p12 = pneg %p2113_p11 }
 0x634   : > { %2307 = dma.done.wait (%p2114_p12), %s1786_s13, 1024  }
 0x635   : > { %2309 = vsyncadd (%p2114_p12), %s1786_s13, 4294966272  ;;  %p22_p13 = scmp.ge.s32.totalorder %s2422_s23, 4   ;;  %s3169_s17 = smov %s2316_s18 }
 0x636   : > { %s3170_s18 = smov %s2320_s19  ;;  %s3171_s19 = smov %s2433_s26 }
 0x637   : > { %s3172_s20 = smov %s2422_s23  ;;  %24 = sbr.rel (!%p22_p13) target bundleno = 6 (0x6), region = 104 }
 0x63c   :  { %1791 = vsyncpa [#allocation3], 1 }
 0x63d   :  { %1793 = vsyncpa [#allocation3 + $0x1], 1 }
 0x63e   :  { %1794 = vsyncpa [#allocation4], 1 }
 0x63f   :  { %1796 = vsyncpa [#allocation4 + $0x1], 1 }

</bundles_post_ra>
